<compile_context>
chip_gen: v7x
topology: tpu7x:2x2x1
jax: 0.10.0
libtpu: 0.0.40
codegen_flags: <defaults>
</compile_context>

<pallas_src>
import functools
import math

import jax
import jax.numpy as jnp
from jax.experimental import pallas as pl
from jax.experimental.pallas import tpu as pltpu

_INV_SQRT2 = 1.0 / math.sqrt(2.0)
_ACT_DTYPE = jnp.bfloat16            # matmul-operand / activation dtype (MXU native)
_VMEM_LIMIT = 48 * 1024 * 1024       # explicit scoped-VMEM cap, safe on v5e/v6e/v7x


# ----------------------------------------------------------------------------
# Helpers
# ----------------------------------------------------------------------------
def _pick_div_tile(dim, prefs):
    """Largest preferred tile that evenly divides `dim`, else the full dim."""
    for t in prefs:
        if dim % t == 0:
            return t
    return dim


def _pick_m_tile(m, prefs):
    """Largest preferred tile <= m (M is padded up to a multiple of it)."""
    for t in prefs:
        if m >= t:
            return t
    return m


def _pad_rows(a, mp):
    pad = mp - a.shape[0]
    return a if pad == 0 else jnp.pad(a, ((0, pad), (0, 0)))


def _finalize(y, activation):
    if activation == "gelu":   # exact (erf) GELU, matches torch.nn.GELU, in f32
        y = 0.5 * y * (1.0 + jax.lax.erf(y * _INV_SQRT2))
    return y


# ----------------------------------------------------------------------------
# Pallas kernels
# ----------------------------------------------------------------------------
def _matmul_kernel(x_ref, w_ref, b_ref, o_ref, acc_ref, *, activation):
    k = pl.program_id(2)

    @pl.when(k == 0)
    def _():
        acc_ref[...] = jnp.zeros_like(acc_ref)

    acc_ref[...] += jnp.dot(x_ref[...], w_ref[...],
                            preferred_element_type=jnp.float32)

    @pl.when(k == pl.num_programs(2) - 1)
    def _():
        y = _finalize(acc_ref[...] + b_ref[...], activation)
        o_ref[...] = y.astype(o_ref.dtype)


def _matmul_res_kernel(x_ref, w_ref, b_ref, r_ref, o_ref, acc_ref, *, activation):
    k = pl.program_id(2)

    @pl.when(k == 0)
    def _():
        acc_ref[...] = jnp.zeros_like(acc_ref)

    acc_ref[...] += jnp.dot(x_ref[...], w_ref[...],
                            preferred_element_type=jnp.float32)

    @pl.when(k == pl.num_programs(2) - 1)
    def _():
        y = _finalize(acc_ref[...] + b_ref[...], activation)
        y = y + r_ref[...].astype(jnp.float32)
        o_ref[...] = y.astype(o_ref.dtype)


def _ln_matmul_kernel(x_ref, g_ref, bt_ref, w_ref, b_ref, o_ref, xn_ref, *,
                      activation):
    # LayerNorm fused into the consuming matmul.  The normalized x tile is
    # computed (in f32) once per M tile at the first N step, cast to bf16 and
    # cached in VMEM scratch for the remaining N tiles.
    @pl.when(pl.program_id(1) == 0)
    def _():
        xv = x_ref[...].astype(jnp.float32)
        mean = jnp.mean(xv, axis=-1, keepdims=True)
        var = jnp.mean(jnp.square(xv - mean), axis=-1, keepdims=True)
        xn = (xv - mean) * jax.lax.rsqrt(var + 1e-5)
        xn_ref[...] = (xn * g_ref[...] + bt_ref[...]).astype(xn_ref.dtype)

    y = jnp.dot(xn_ref[...], w_ref[...],
                preferred_element_type=jnp.float32) + b_ref[...]
    o_ref[...] = _finalize(y, activation).astype(o_ref.dtype)


def _attn_split_kernel(q_ref, k_ref, v_ref, o_ref, *, hg, dh, scale):
    # One (batch, head-group) per grid step.  Each ref block is [1, S, hg*dh]
    # bf16 (lane-sliced out of the packed [B, S, 3D] QKV slab by the BlockSpec).
    qg = q_ref[0]
    kg = k_ref[0]
    vg = v_ref[0]
    outs = []
    for h in range(hg):                      # static unroll over heads in group
        q = qg[:, h * dh:(h + 1) * dh]
        k = kg[:, h * dh:(h + 1) * dh]
        v = vg[:, h * dh:(h + 1) * dh]
        s = jax.lax.dot_general(q, k, (((1,), (1,)), ((), ())),
                                preferred_element_type=jnp.float32) * scale
        m = jnp.max(s, axis=-1, keepdims=True)
        p = jnp.exp(s - m)
        inv = pl.reciprocal(jnp.sum(p, axis=-1, keepdims=True), approx=True)
        o = jnp.dot(p.astype(v.dtype), v,
                    preferred_element_type=jnp.float32) * inv
        outs.append(o)
    o_ref[0] = jnp.concatenate(outs, axis=-1).astype(o_ref.dtype)


def _attn_packed_kernel(qkv_ref, o_ref, *, heads, dh, scale):
    # Fallback for tiny models (D not expressible as >=128-lane head groups).
    # The whole [S, 3D] slab is small in that regime, so loading it is cheap.
    qkv = qkv_ref[0]
    D = heads * dh
    outs = []
    for h in range(heads):
        q = qkv[:, h * dh:(h + 1) * dh]
        k = qkv[:, D + h * dh:D + (h + 1) * dh]
        v = qkv[:, 2 * D + h * dh:2 * D + (h + 1) * dh]
        s = jax.lax.dot_general(q, k, (((1,), (1,)), ((), ())),
                                preferred_element_type=jnp.float32) * scale
        m = jnp.max(s, axis=-1, keepdims=True)
        p = jnp.exp(s - m)
        inv = pl.reciprocal(jnp.sum(p, axis=-1, keepdims=True), approx=True)
        outs.append(jnp.dot(p.astype(v.dtype), v,
                            preferred_element_type=jnp.float32) * inv)
    o_ref[0] = jnp.concatenate(outs, axis=-1).astype(o_ref.dtype)


# ----------------------------------------------------------------------------
# Wrappers (grids / BlockSpecs)
# ----------------------------------------------------------------------------
def matmul_bias(x, w, b, residual=None, activation=None, out_dtype=None):
    """Tiled, pipelined  y = act(x @ w + b) [+ residual], bf16 operands / f32 acc."""
    M, K = x.shape
    N = w.shape[1]
    out_dtype = out_dtype or x.dtype
    tm = _pick_m_tile(M, (512, 256, 128))
    tn = _pick_div_tile(N, (512, 256, 128))
    tk = _pick_div_tile(K, (1024, 512, 256))
    Mp = -(-M // tm) * tm
    xp = _pad_rows(x, Mp)
    grid = (Mp // tm, N // tn, K // tk)

    x_spec = pl.BlockSpec((tm, tk), lambda i, j, k: (i, k))
    w_spec = pl.BlockSpec((tk, tn), lambda i, j, k: (k, j))
    b_spec = pl.BlockSpec((1, tn), lambda i, j, k: (0, j))
    o_spec = pl.BlockSpec((tm, tn), lambda i, j, k: (i, j))
    scratch = [pltpu.VMEM((tm, tn), jnp.float32)]
    cp = pltpu.CompilerParams(
        dimension_semantics=("parallel", "parallel", "arbitrary"),
        vmem_limit_bytes=_VMEM_LIMIT)

    if residual is None:
        out = pl.pallas_call(
            functools.partial(_matmul_kernel, activation=activation),
            out_shape=jax.ShapeDtypeStruct((Mp, N), out_dtype),
            grid=grid,
            in_specs=[x_spec, w_spec, b_spec],
            out_specs=o_spec,
            scratch_shapes=scratch,
            compiler_params=cp,
        )(xp, w, b.reshape(1, N))
    else:
        rp = _pad_rows(residual, Mp)
        r_spec = pl.BlockSpec((tm, tn), lambda i, j, k: (i, j))
        out = pl.pallas_call(
            functools.partial(_matmul_res_kernel, activation=activation),
            out_shape=jax.ShapeDtypeStruct((Mp, N), out_dtype),
            grid=grid,
            in_specs=[x_spec, w_spec, b_spec, r_spec],
            out_specs=o_spec,
            scratch_shapes=scratch,
            compiler_params=cp,
        )(xp, w, b.reshape(1, N), rp)
    return out[:M] if Mp != M else out


def ln_matmul(x, gamma, beta, w, b, activation=None, out_dtype=None):
    """Fused  y = act(LayerNorm(x) @ w + b)  (full-K blocks, tiled over M and N)."""
    M, K = x.shape
    N = w.shape[1]
    out_dtype = out_dtype or x.dtype
    tm = _pick_m_tile(M, (256, 128))         # keeps the (tm, K) scratch small
    tn = _pick_div_tile(N, (512, 256, 128))
    Mp = -(-M // tm) * tm
    xp = _pad_rows(x, Mp)
    grid = (Mp // tm, N // tn)

    out = pl.pallas_call(
        functools.partial(_ln_matmul_kernel, activation=activation),
        out_shape=jax.ShapeDtypeStruct((Mp, N), out_dtype),
        grid=grid,
        in_specs=[pl.BlockSpec((tm, K), lambda i, j: (i, 0)),
                  pl.BlockSpec((1, K), lambda i, j: (0, 0)),
                  pl.BlockSpec((1, K), lambda i, j: (0, 0)),
                  pl.BlockSpec((K, tn), lambda i, j: (0, j)),
                  pl.BlockSpec((1, tn), lambda i, j: (0, j))],
        out_specs=pl.BlockSpec((tm, tn), lambda i, j: (i, j)),
        scratch_shapes=[pltpu.VMEM((tm, K), _ACT_DTYPE)],
        # N axis must stay "arbitrary" (sequential per core) so the j==0
        # scratch fill is seen by later j tiles of the same M tile.
        compiler_params=pltpu.CompilerParams(
            dimension_semantics=("parallel", "arbitrary"),
            vmem_limit_bytes=_VMEM_LIMIT),
    )(xp, gamma.reshape(1, K), beta.reshape(1, K), w, b.reshape(1, N))
    return out[:M] if Mp != M else out


def attention(qkv, heads, dh, scale):
    """qkv: [B, S, 3*D] (packed q|k|v) -> [B, S, D] attention output."""
    B, S, D3 = qkv.shape
    D = heads * dh

    # smallest head group whose lane width is a multiple of 128 (max TC parallelism)
    hg = None
    for g in range(1, heads + 1):
        if heads % g == 0 and (g * dh) % 128 == 0:
            hg = g
            break

    if hg is None:
        # tiny-model fallback: whole packed slab per batch element
        return pl.pallas_call(
            functools.partial(_attn_packed_kernel, heads=heads, dh=dh, scale=scale),
            out_shape=jax.ShapeDtypeStruct((B, S, D), qkv.dtype),
            grid=(B,),
            in_specs=[pl.BlockSpec((1, S, D3), lambda b: (b, 0, 0))],
            out_specs=pl.BlockSpec((1, S, D), lambda b: (b, 0, 0)),
            compiler_params=pltpu.CompilerParams(
                dimension_semantics=("parallel",),
                vmem_limit_bytes=_VMEM_LIMIT),
        )(qkv)

    hgdh = hg * dh
    kq_off = 0
    kk_off = D // hgdh
    kv_off = (2 * D) // hgdh
    return pl.pallas_call(
        functools.partial(_attn_split_kernel, hg=hg, dh=dh, scale=scale),
        out_shape=jax.ShapeDtypeStruct((B, S, D), qkv.dtype),
        grid=(B, heads // hg),
        in_specs=[pl.BlockSpec((1, S, hgdh), lambda b, g: (b, 0, kq_off + g)),
                  pl.BlockSpec((1, S, hgdh), lambda b, g: (b, 0, kk_off + g)),
                  pl.BlockSpec((1, S, hgdh), lambda b, g: (b, 0, kv_off + g))],
        out_specs=pl.BlockSpec((1, S, hgdh), lambda b, g: (b, 0, g)),
        compiler_params=pltpu.CompilerParams(
            dimension_semantics=("parallel", "parallel"),
            vmem_limit_bytes=_VMEM_LIMIT),
    )(qkv, qkv, qkv)


# ----------------------------------------------------------------------------
# ViT forward (glue in plain JAX, compute in Pallas)
# ----------------------------------------------------------------------------
def vit_forward(x, params, cfg):
    B, C, H, W = x.shape
    P = cfg["patch_size"]
    D = cfg["dim"]
    heads = cfg["heads"]
    Dh = D // heads
    gh, gw = H // P, W // P
    Np = gh * gw
    S = Np + 1
    scale = 1.0 / math.sqrt(Dh)

    # patch extraction equivalent to Conv2d(kernel=stride=P), weight [D, C, P, P]
    patches = (x.reshape(B, C, gh, P, gw, P)
                 .transpose(0, 2, 4, 1, 3, 5)
                 .reshape(B * Np, C * P * P)).astype(_ACT_DTYPE)
    tok = matmul_bias(patches, params["w_pe"], params["b_pe"]).reshape(B, Np, D)

    cls = jnp.broadcast_to(params["cls"], (B, 1, D)).astype(_ACT_DTYPE)
    h = jnp.concatenate([cls, tok], axis=1) + params["pos"].astype(_ACT_DTYPE)

    for lp in params["layers"]:
        hflat = h.reshape(B * S, D)
        # --- attention block (pre-LN, LN fused into the QKV matmul) ---
        qkv = ln_matmul(hflat, lp["ln1_g"], lp["ln1_b"],
                        lp["w_qkv"], lp["b_qkv"]).reshape(B, S, 3 * D)
        attn = attention(qkv, heads=heads, dh=Dh, scale=scale)      # [B, S, D]
        h = matmul_bias(attn.reshape(B * S, D), lp["wo"], lp["bo"],
                        residual=hflat).reshape(B, S, D)
        # --- MLP block (pre-LN, LN fused into the first MLP matmul) ---
        hflat = h.reshape(B * S, D)
        y = ln_matmul(hflat, lp["ln2_g"], lp["ln2_b"],
                      lp["w1"], lp["b1"], activation="gelu")
        h = matmul_bias(y, lp["w2"], lp["b2"],
                        residual=hflat).reshape(B, S, D)

    # final LN + classification head on the CLS token (fused, lane-padded N)
    cls_tok = h[:, 0, :]
    logits_pad = ln_matmul(cls_tok, params["lnf_g"], params["lnf_b"],
                           params["w_fc"], params["b_fc"],
                           out_dtype=jnp.float32)
    return logits_pad[:, :cfg["num_classes"]]


# ----------------------------------------------------------------------------
# Deterministic parameter initialization (xavier-uniform weights, tiny biases)
# ----------------------------------------------------------------------------
def xavier_uniform(key, shape):
    fan_in, fan_out = shape[0], shape[1]
    limit = math.sqrt(6.0 / (fan_in + fan_out))
    return jax.random.uniform(key, shape, jnp.float32, -limit, limit)


def init_params(key, cfg):
    C, P, D, Mm = cfg["channels"], cfg["patch_size"], cfg["dim"], cfg["mlp_dim"]
    gh = cfg["image_size"] // P
    S = gh * gh + 1
    NC = cfg["num_classes"]
    NCp = -(-NC // 128) * 128               # lane-pad the head output dim
    keys = iter(jax.random.split(key, 8 + 12 * cfg["depth"]))

    def bias(shape):
        return 1e-6 * jax.random.normal(next(keys), shape, jnp.float32)

    w_fc = xavier_uniform(next(keys), (D, NC))
    params = {
        "w_pe": xavier_uniform(next(keys), (C * P * P, D)).astype(_ACT_DTYPE),
        "b_pe": bias((D,)),
        "cls": 0.02 * jax.random.normal(next(keys), (1, 1, D), jnp.float32),
        "pos": 0.02 * jax.random.normal(next(keys), (1, S, D), jnp.float32),
        "lnf_g": jnp.ones((D,), jnp.float32),
        "lnf_b": jnp.zeros((D,), jnp.float32),
        "w_fc": jnp.pad(w_fc, ((0, 0), (0, NCp - NC))).astype(_ACT_DTYPE),
        "b_fc": jnp.pad(bias((NC,)), ((0, NCp - NC),)),
        "layers": [],
    }
    for _ in range(cfg["depth"]):
        wq = xavier_uniform(next(keys), (D, D))
        wk = xavier_uniform(next(keys), (D, D))
        wv = xavier_uniform(next(keys), (D, D))
        bq, bk, bv = bias((D,)), bias((D,)), bias((D,))
        params["layers"].append({
            "ln1_g": jnp.ones((D,), jnp.float32), "ln1_b": jnp.zeros((D,), jnp.float32),
            "w_qkv": jnp.concatenate([wq, wk, wv], axis=1).astype(_ACT_DTYPE),
            "b_qkv": jnp.concatenate([bq, bk, bv], axis=0),
            "wo": xavier_uniform(next(keys), (D, D)).astype(_ACT_DTYPE), "bo": bias((D,)),
            "ln2_g": jnp.ones((D,), jnp.float32), "ln2_b": jnp.zeros((D,), jnp.float32),
            "w1": xavier_uniform(next(keys), (D, Mm)).astype(_ACT_DTYPE), "b1": bias((Mm,)),
            "w2": xavier_uniform(next(keys), (Mm, D)).astype(_ACT_DTYPE), "b2": bias((D,)),
        })
    return params


if __name__ == "__main__":
    cfg = dict(
        image_size=16,
        patch_size=4,
        channels=3,
        num_classes=10,
        dim=128,             # hidden_size (128 so the lane-sliced attention path runs)
        depth=2,             # num_hidden_layers
        heads=4,             # num_attention_heads
        mlp_dim=256,         # intermediate_size
    )

    root = jax.random.PRNGKey(0)
    k_x, k_p = jax.random.split(root)
    x = jax.random.normal(k_x, (2, cfg["channels"], cfg["image_size"], cfg["image_size"]),
                          jnp.float32)
    params = init_params(k_p, cfg)

    fwd = jax.jit(functools.partial(vit_forward, cfg=cfg))
    logits = fwd(x, params)
    jax.block_until_ready(logits)
    assert logits.shape == (2, cfg["num_classes"])
    assert bool(jnp.all(jnp.isfinite(logits)))
    print("KERNEL_OK")
</pallas_src>

<mosaic_0001>
module attributes {stable_mosaic.version = 11 : i64} {
  func.func @_matmul_kernel(%arg0: i32, %arg1: i32, %arg2: i32, %arg3: memref<32x48xbf16, #tpu.memory_space<vmem>>, %arg4: memref<48x128xbf16, #tpu.memory_space<vmem>>, %arg5: memref<1x128xf32, #tpu.memory_space<vmem>>, %arg6: memref<32x128xbf16, #tpu.memory_space<vmem>>, %arg7: memref<32x128xf32, #tpu.memory_space<vmem>>) attributes {dimension_semantics = [#tpu.dimension_semantics<parallel>, #tpu.dimension_semantics<parallel>, #tpu.dimension_semantics<arbitrary>], iteration_bounds = array<i64: 1, 1, 1>, scalar_prefetch = 0 : i64, scratch_operands = 1 : i64, tpu.core_type = #tpu.core_type<tc>, window_params = [{transform_indices = @transform_0, window_bounds = array<i64: 32, 48>}, {transform_indices = @transform_1, window_bounds = array<i64: 48, 128>}, {transform_indices = @transform_2, window_bounds = array<i64: 1, 128>}, {transform_indices = @transform_3, window_bounds = array<i64: 32, 128>}]} {
    %c0_i32 = arith.constant 0 : i32
    %0 = arith.cmpi eq, %arg2, %c0_i32 : i32
    %1 = arith.extui %0 : i1 to i32
    %c0_i32_0 = arith.constant 0 : i32
    %2 = arith.cmpi ne, %1, %c0_i32_0 : i32
    scf.if %2 {
      %cst_10 = arith.constant 0.000000e+00 : f32
      %12 = vector.broadcast %cst_10 : f32 to vector<32x128xf32>
      %c0_11 = arith.constant 0 : index
      %c0_12 = arith.constant 0 : index
      %13 = vector.load %arg7[%c0_11, %c0_12] : memref<32x128xf32, #tpu.memory_space<vmem>>, vector<32x128xf32>
      tpu.vector_store %arg7[%c0_11, %c0_12], %12 {strides = array<i32>} : memref<32x128xf32, #tpu.memory_space<vmem>>, vector<32x128xf32>,
    } else {
    }
    %c0 = arith.constant 0 : index
    %c0_1 = arith.constant 0 : index
    %3 = vector.load %arg7[%c0, %c0_1] : memref<32x128xf32, #tpu.memory_space<vmem>>, vector<32x128xf32>
    %c0_2 = arith.constant 0 : index
    %c0_3 = arith.constant 0 : index
    %4 = vector.load %arg3[%c0_2, %c0_3] : memref<32x48xbf16, #tpu.memory_space<vmem>>, vector<32x48xbf16>
    %c0_4 = arith.constant 0 : index
    %c0_5 = arith.constant 0 : index
    %5 = vector.load %arg4[%c0_4, %c0_5] : memref<48x128xbf16, #tpu.memory_space<vmem>>, vector<48x128xbf16>
    %cst = arith.constant dense<0.000000e+00> : vector<32x128xf32>
    %6 = tpu.matmul %4, %5, %cst {dimension_numbers = #tpu.dot_dimension_numbers<[1], [0], [0], [1], [0, 0, 1, 1], [], []>} : vector<32x48xbf16>, vector<48x128xbf16>, vector<32x128xf32> -> vector<32x128xf32>
    %7 = arith.addf %3, %6 : vector<32x128xf32>
    %c0_6 = arith.constant 0 : index
    %c0_7 = arith.constant 0 : index
    %8 = vector.load %arg7[%c0_6, %c0_7] : memref<32x128xf32, #tpu.memory_space<vmem>>, vector<32x128xf32>
    tpu.vector_store %arg7[%c0_6, %c0_7], %7 {strides = array<i32>} : memref<32x128xf32, #tpu.memory_space<vmem>>, vector<32x128xf32>,
    %c0_i32_8 = arith.constant 0 : i32
    %9 = arith.cmpi eq, %arg2, %c0_i32_8 : i32
    %10 = arith.extui %9 : i1 to i32
    %c0_i32_9 = arith.constant 0 : i32
    %11 = arith.cmpi ne, %10, %c0_i32_9 : i32
    scf.if %11 {
      %c0_10 = arith.constant 0 : index
      %c0_11 = arith.constant 0 : index
      %12 = vector.load %arg7[%c0_10, %c0_11] : memref<32x128xf32, #tpu.memory_space<vmem>>, vector<32x128xf32>
      %c0_12 = arith.constant 0 : index
      %c0_13 = arith.constant 0 : index
      %13 = vector.load %arg5[%c0_12, %c0_13] : memref<1x128xf32, #tpu.memory_space<vmem>>, vector<1x128xf32>
      %14 = vector.broadcast %13 : vector<1x128xf32> to vector<32x128xf32>
      %15 = arith.addf %12, %14 : vector<32x128xf32>
      %16 = arith.truncf %15 : vector<32x128xf32> to vector<32x128xbf16>
      %c0_14 = arith.constant 0 : index
      %c0_15 = arith.constant 0 : index
      %17 = vector.load %arg6[%c0_14, %c0_15] : memref<32x128xbf16, #tpu.memory_space<vmem>>, vector<32x128xbf16>
      tpu.vector_store %arg6[%c0_14, %c0_15], %16 {strides = array<i32>} : memref<32x128xbf16, #tpu.memory_space<vmem>>, vector<32x128xbf16>,
    } else {
    }
    return
  }
  func.func @transform_0(%arg0: i32, %arg1: i32, %arg2: i32) -> (i32, i32) {
    %c0_i32 = arith.constant 0 : i32
    return %arg0, %arg2 : i32, i32
  }
  func.func @transform_1(%arg0: i32, %arg1: i32, %arg2: i32) -> (i32, i32) {
    %c0_i32 = arith.constant 0 : i32
    return %arg2, %arg1 : i32, i32
  }
  func.func @transform_2(%arg0: i32, %arg1: i32, %arg2: i32) -> (i32, i32) {
    %c0_i32 = arith.constant 0 : i32
    %c0_i32_0 = arith.constant 0 : i32
    return %c0_i32, %arg1 : i32, i32
  }
  func.func @transform_3(%arg0: i32, %arg1: i32, %arg2: i32) -> (i32, i32) {
    %c0_i32 = arith.constant 0 : i32
    return %arg0, %arg1 : i32, i32
  }
}

module attributes {stable_mosaic.version = 11 : i64} {
  func.func @_matmul_res_kernel(%arg0: i32, %arg1: i32, %arg2: i32, %arg3: memref<34x128xbf16, #tpu.memory_space<vmem>>, %arg4: memref<128x128xbf16, #tpu.memory_space<vmem>>, %arg5: memref<1x128xf32, #tpu.memory_space<vmem>>, %arg6: memref<34x128xbf16, #tpu.memory_space<vmem>>, %arg7: memref<34x128xbf16, #tpu.memory_space<vmem>>, %arg8: memref<34x128xf32, #tpu.memory_space<vmem>>) attributes {dimension_semantics = [#tpu.dimension_semantics<parallel>, #tpu.dimension_semantics<parallel>, #tpu.dimension_semantics<arbitrary>], iteration_bounds = array<i64: 1, 1, 1>, scalar_prefetch = 0 : i64, scratch_operands = 1 : i64, tpu.core_type = #tpu.core_type<tc>, window_params = [{transform_indices = @transform_0, window_bounds = array<i64: 34, 128>}, {transform_indices = @transform_1, window_bounds = array<i64: 128, 128>}, {transform_indices = @transform_2, window_bounds = array<i64: 1, 128>}, {transform_indices = @transform_3, window_bounds = array<i64: 34, 128>}, {transform_indices = @transform_4, window_bounds = array<i64: 34, 128>}]} {
    %c0_i32 = arith.constant 0 : i32
    %0 = arith.cmpi eq, %arg2, %c0_i32 : i32
    %1 = arith.extui %0 : i1 to i32
    %c0_i32_0 = arith.constant 0 : i32
    %2 = arith.cmpi ne, %1, %c0_i32_0 : i32
    scf.if %2 {
      %cst_10 = arith.constant 0.000000e+00 : f32
      %12 = vector.broadcast %cst_10 : f32 to vector<34x128xf32>
      %c0_11 = arith.constant 0 : index
      %c0_12 = arith.constant 0 : index
      %13 = vector.load %arg8[%c0_11, %c0_12] : memref<34x128xf32, #tpu.memory_space<vmem>>, vector<34x128xf32>
      tpu.vector_store %arg8[%c0_11, %c0_12], %12 {strides = array<i32>} : memref<34x128xf32, #tpu.memory_space<vmem>>, vector<34x128xf32>,
    } else {
    }
    %c0 = arith.constant 0 : index
    %c0_1 = arith.constant 0 : index
    %3 = vector.load %arg8[%c0, %c0_1] : memref<34x128xf32, #tpu.memory_space<vmem>>, vector<34x128xf32>
    %c0_2 = arith.constant 0 : index
    %c0_3 = arith.constant 0 : index
    %4 = vector.load %arg3[%c0_2, %c0_3] : memref<34x128xbf16, #tpu.memory_space<vmem>>, vector<34x128xbf16>
    %c0_4 = arith.constant 0 : index
    %c0_5 = arith.constant 0 : index
    %5 = vector.load %arg4[%c0_4, %c0_5] : memref<128x128xbf16, #tpu.memory_space<vmem>>, vector<128x128xbf16>
    %cst = arith.constant dense<0.000000e+00> : vector<34x128xf32>
    %6 = tpu.matmul %4, %5, %cst {dimension_numbers = #tpu.dot_dimension_numbers<[1], [0], [0], [1], [0, 0, 1, 1], [], []>} : vector<34x128xbf16>, vector<128x128xbf16>, vector<34x128xf32> -> vector<34x128xf32>
    %7 = arith.addf %3, %6 : vector<34x128xf32>
    %c0_6 = arith.constant 0 : index
    %c0_7 = arith.constant 0 : index
    %8 = vector.load %arg8[%c0_6, %c0_7] : memref<34x128xf32, #tpu.memory_space<vmem>>, vector<34x128xf32>
    tpu.vector_store %arg8[%c0_6, %c0_7], %7 {strides = array<i32>} : memref<34x128xf32, #tpu.memory_space<vmem>>, vector<34x128xf32>,
    %c0_i32_8 = arith.constant 0 : i32
    %9 = arith.cmpi eq, %arg2, %c0_i32_8 : i32
    %10 = arith.extui %9 : i1 to i32
    %c0_i32_9 = arith.constant 0 : i32
    %11 = arith.cmpi ne, %10, %c0_i32_9 : i32
    scf.if %11 {
      %c0_10 = arith.constant 0 : index
      %c0_11 = arith.constant 0 : index
      %12 = vector.load %arg8[%c0_10, %c0_11] : memref<34x128xf32, #tpu.memory_space<vmem>>, vector<34x128xf32>
      %c0_12 = arith.constant 0 : index
      %c0_13 = arith.constant 0 : index
      %13 = vector.load %arg5[%c0_12, %c0_13] : memref<1x128xf32, #tpu.memory_space<vmem>>, vector<1x128xf32>
      %14 = vector.broadcast %13 : vector<1x128xf32> to vector<34x128xf32>
      %15 = arith.addf %12, %14 : vector<34x128xf32>
      %c0_14 = arith.constant 0 : index
      %c0_15 = arith.constant 0 : index
      %16 = vector.load %arg6[%c0_14, %c0_15] : memref<34x128xbf16, #tpu.memory_space<vmem>>, vector<34x128xbf16>
      %17 = arith.extf %16 : vector<34x128xbf16> to vector<34x128xf32>
      %18 = arith.addf %15, %17 : vector<34x128xf32>
      %19 = arith.truncf %18 : vector<34x128xf32> to vector<34x128xbf16>
      %c0_16 = arith.constant 0 : index
      %c0_17 = arith.constant 0 : index
      %20 = vector.load %arg7[%c0_16, %c0_17] : memref<34x128xbf16, #tpu.memory_space<vmem>>, vector<34x128xbf16>
      tpu.vector_store %arg7[%c0_16, %c0_17], %19 {strides = array<i32>} : memref<34x128xbf16, #tpu.memory_space<vmem>>, vector<34x128xbf16>,
    } else {
    }
    return
  }
  func.func @transform_0(%arg0: i32, %arg1: i32, %arg2: i32) -> (i32, i32) {
    %c0_i32 = arith.constant 0 : i32
    return %arg0, %arg2 : i32, i32
  }
  func.func @transform_1(%arg0: i32, %arg1: i32, %arg2: i32) -> (i32, i32) {
    %c0_i32 = arith.constant 0 : i32
    return %arg2, %arg1 : i32, i32
  }
  func.func @transform_2(%arg0: i32, %arg1: i32, %arg2: i32) -> (i32, i32) {
    %c0_i32 = arith.constant 0 : i32
    %c0_i32_0 = arith.constant 0 : i32
    return %c0_i32, %arg1 : i32, i32
  }
  func.func @transform_3(%arg0: i32, %arg1: i32, %arg2: i32) -> (i32, i32) {
    %c0_i32 = arith.constant 0 : i32
    return %arg0, %arg1 : i32, i32
  }
  func.func @transform_4(%arg0: i32, %arg1: i32, %arg2: i32) -> (i32, i32) {
    %c0_i32 = arith.constant 0 : i32
    return %arg0, %arg1 : i32, i32
  }
}

module attributes {stable_mosaic.version = 11 : i64} {
  func.func @_attn_split_kernel(%arg0: i32, %arg1: i32, %arg2: memref<1x17x128xbf16, #tpu.memory_space<vmem>>, %arg3: memref<1x17x128xbf16, #tpu.memory_space<vmem>>, %arg4: memref<1x17x128xbf16, #tpu.memory_space<vmem>>, %arg5: memref<1x17x128xbf16, #tpu.memory_space<vmem>>) attributes {dimension_semantics = [#tpu.dimension_semantics<parallel>, #tpu.dimension_semantics<parallel>], iteration_bounds = array<i64: 2, 1>, scalar_prefetch = 0 : i64, scratch_operands = 0 : i64, tpu.core_type = #tpu.core_type<tc>, window_params = [{transform_indices = @transform_0, window_bounds = array<i64: 1, 17, 128>}, {transform_indices = @transform_1, window_bounds = array<i64: 1, 17, 128>}, {transform_indices = @transform_2, window_bounds = array<i64: 1, 17, 128>}, {transform_indices = @transform_3, window_bounds = array<i64: 1, 17, 128>}]} {
    %c0 = arith.constant 0 : index
    %c0_0 = arith.constant 0 : index
    %c0_1 = arith.constant 0 : index
    %0 = vector.load %arg2[%c0, %c0_0, %c0_1] : memref<1x17x128xbf16, #tpu.memory_space<vmem>>, vector<1x17x128xbf16>
    %1 = vector.shape_cast %0 : vector<1x17x128xbf16> to vector<17x128xbf16>
    %c0_2 = arith.constant 0 : index
    %c0_3 = arith.constant 0 : index
    %c0_4 = arith.constant 0 : index
    %2 = vector.load %arg3[%c0_2, %c0_3, %c0_4] : memref<1x17x128xbf16, #tpu.memory_space<vmem>>, vector<1x17x128xbf16>
    %3 = vector.shape_cast %2 : vector<1x17x128xbf16> to vector<17x128xbf16>
    %c0_5 = arith.constant 0 : index
    %c0_6 = arith.constant 0 : index
    %c0_7 = arith.constant 0 : index
    %4 = vector.load %arg4[%c0_5, %c0_6, %c0_7] : memref<1x17x128xbf16, #tpu.memory_space<vmem>>, vector<1x17x128xbf16>
    %5 = vector.shape_cast %4 : vector<1x17x128xbf16> to vector<17x128xbf16>
    %6 = vector.extract_strided_slice %1 {offsets = [0, 0], sizes = [17, 32], strides = [1, 1]} : vector<17x128xbf16> to vector<17x32xbf16>
    %7 = vector.extract_strided_slice %3 {offsets = [0, 0], sizes = [17, 32], strides = [1, 1]} : vector<17x128xbf16> to vector<17x32xbf16>
    %8 = vector.extract_strided_slice %5 {offsets = [0, 0], sizes = [17, 32], strides = [1, 1]} : vector<17x128xbf16> to vector<17x32xbf16>
    %cst = arith.constant dense<0.000000e+00> : vector<17x17xf32>
    %9 = tpu.matmul %6, %7, %cst {dimension_numbers = #tpu.dot_dimension_numbers<[1], [1], [0], [0], [0, 0, 1, 0], [], []>} : vector<17x32xbf16>, vector<17x32xbf16>, vector<17x17xf32> -> vector<17x17xf32>
    %cst_8 = arith.constant 0.176776692 : f32
    %10 = vector.broadcast %cst_8 : f32 to vector<17x17xf32>
    %11 = arith.mulf %9, %10 : vector<17x17xf32>
    %cst_9 = arith.constant dense<0xFF800000> : vector<17xf32>
    %12 = vector.multi_reduction <maximumf>, %11, %cst_9 [1] : vector<17x17xf32> to vector<17xf32>
    %13 = vector.shape_cast %12 : vector<17xf32> to vector<17x1xf32>
    %14 = vector.broadcast %13 : vector<17x1xf32> to vector<17x17xf32>
    %15 = arith.subf %11, %14 : vector<17x17xf32>
    %16 = math.exp %15 : vector<17x17xf32>
    %cst_10 = arith.constant dense<0.000000e+00> : vector<17xf32>
    %17 = vector.multi_reduction <add>, %16, %cst_10 [1] : vector<17x17xf32> to vector<17xf32>
    %18 = vector.shape_cast %17 : vector<17xf32> to vector<17x1xf32>
    %19 = tpu.reciprocal %18 {approx = true} : vector<17x1xf32> -> vector<17x1xf32>
    %20 = arith.truncf %16 : vector<17x17xf32> to vector<17x17xbf16>
    %cst_11 = arith.constant dense<0.000000e+00> : vector<17x32xf32>
    %21 = tpu.matmul %20, %8, %cst_11 {dimension_numbers = #tpu.dot_dimension_numbers<[1], [0], [0], [1], [0, 0, 1, 1], [], []>} : vector<17x17xbf16>, vector<17x32xbf16>, vector<17x32xf32> -> vector<17x32xf32>
    %22 = vector.broadcast %19 : vector<17x1xf32> to vector<17x32xf32>
    %23 = arith.mulf %21, %22 : vector<17x32xf32>
    %24 = vector.extract_strided_slice %1 {offsets = [0, 32], sizes = [17, 32], strides = [1, 1]} : vector<17x128xbf16> to vector<17x32xbf16>
    %25 = vector.extract_strided_slice %3 {offsets = [0, 32], sizes = [17, 32], strides = [1, 1]} : vector<17x128xbf16> to vector<17x32xbf16>
    %26 = vector.extract_strided_slice %5 {offsets = [0, 32], sizes = [17, 32], strides = [1, 1]} : vector<17x128xbf16> to vector<17x32xbf16>
    %cst_12 = arith.constant dense<0.000000e+00> : vector<17x17xf32>
    %27 = tpu.matmul %24, %25, %cst_12 {dimension_numbers = #tpu.dot_dimension_numbers<[1], [1], [0], [0], [0, 0, 1, 0], [], []>} : vector<17x32xbf16>, vector<17x32xbf16>, vector<17x17xf32> -> vector<17x17xf32>
    %cst_13 = arith.constant 0.176776692 : f32
    %28 = vector.broadcast %cst_13 : f32 to vector<17x17xf32>
    %29 = arith.mulf %27, %28 : vector<17x17xf32>
    %cst_14 = arith.constant dense<0xFF800000> : vector<17xf32>
    %30 = vector.multi_reduction <maximumf>, %29, %cst_14 [1] : vector<17x17xf32> to vector<17xf32>
    %31 = vector.shape_cast %30 : vector<17xf32> to vector<17x1xf32>
    %32 = vector.broadcast %31 : vector<17x1xf32> to vector<17x17xf32>
    %33 = arith.subf %29, %32 : vector<17x17xf32>
    %34 = math.exp %33 : vector<17x17xf32>
    %cst_15 = arith.constant dense<0.000000e+00> : vector<17xf32>
    %35 = vector.multi_reduction <add>, %34, %cst_15 [1] : vector<17x17xf32> to vector<17xf32>
    %36 = vector.shape_cast %35 : vector<17xf32> to vector<17x1xf32>
    %37 = tpu.reciprocal %36 {approx = true} : vector<17x1xf32> -> vector<17x1xf32>
    %38 = arith.truncf %34 : vector<17x17xf32> to vector<17x17xbf16>
    %cst_16 = arith.constant dense<0.000000e+00> : vector<17x32xf32>
    %39 = tpu.matmul %38, %26, %cst_16 {dimension_numbers = #tpu.dot_dimension_numbers<[1], [0], [0], [1], [0, 0, 1, 1], [], []>} : vector<17x17xbf16>, vector<17x32xbf16>, vector<17x32xf32> -> vector<17x32xf32>
    %40 = vector.broadcast %37 : vector<17x1xf32> to vector<17x32xf32>
    %41 = arith.mulf %39, %40 : vector<17x32xf32>
    %42 = vector.extract_strided_slice %1 {offsets = [0, 64], sizes = [17, 32], strides = [1, 1]} : vector<17x128xbf16> to vector<17x32xbf16>
    %43 = vector.extract_strided_slice %3 {offsets = [0, 64], sizes = [17, 32], strides = [1, 1]} : vector<17x128xbf16> to vector<17x32xbf16>
    %44 = vector.extract_strided_slice %5 {offsets = [0, 64], sizes = [17, 32], strides = [1, 1]} : vector<17x128xbf16> to vector<17x32xbf16>
    %cst_17 = arith.constant dense<0.000000e+00> : vector<17x17xf32>
    %45 = tpu.matmul %42, %43, %cst_17 {dimension_numbers = #tpu.dot_dimension_numbers<[1], [1], [0], [0], [0, 0, 1, 0], [], []>} : vector<17x32xbf16>, vector<17x32xbf16>, vector<17x17xf32> -> vector<17x17xf32>
    %cst_18 = arith.constant 0.176776692 : f32
    %46 = vector.broadcast %cst_18 : f32 to vector<17x17xf32>
    %47 = arith.mulf %45, %46 : vector<17x17xf32>
    %cst_19 = arith.constant dense<0xFF800000> : vector<17xf32>
    %48 = vector.multi_reduction <maximumf>, %47, %cst_19 [1] : vector<17x17xf32> to vector<17xf32>
    %49 = vector.shape_cast %48 : vector<17xf32> to vector<17x1xf32>
    %50 = vector.broadcast %49 : vector<17x1xf32> to vector<17x17xf32>
    %51 = arith.subf %47, %50 : vector<17x17xf32>
    %52 = math.exp %51 : vector<17x17xf32>
    %cst_20 = arith.constant dense<0.000000e+00> : vector<17xf32>
    %53 = vector.multi_reduction <add>, %52, %cst_20 [1] : vector<17x17xf32> to vector<17xf32>
    %54 = vector.shape_cast %53 : vector<17xf32> to vector<17x1xf32>
    %55 = tpu.reciprocal %54 {approx = true} : vector<17x1xf32> -> vector<17x1xf32>
    %56 = arith.truncf %52 : vector<17x17xf32> to vector<17x17xbf16>
    %cst_21 = arith.constant dense<0.000000e+00> : vector<17x32xf32>
    %57 = tpu.matmul %56, %44, %cst_21 {dimension_numbers = #tpu.dot_dimension_numbers<[1], [0], [0], [1], [0, 0, 1, 1], [], []>} : vector<17x17xbf16>, vector<17x32xbf16>, vector<17x32xf32> -> vector<17x32xf32>
    %58 = vector.broadcast %55 : vector<17x1xf32> to vector<17x32xf32>
    %59 = arith.mulf %57, %58 : vector<17x32xf32>
    %60 = vector.extract_strided_slice %1 {offsets = [0, 96], sizes = [17, 32], strides = [1, 1]} : vector<17x128xbf16> to vector<17x32xbf16>
    %61 = vector.extract_strided_slice %3 {offsets = [0, 96], sizes = [17, 32], strides = [1, 1]} : vector<17x128xbf16> to vector<17x32xbf16>
    %62 = vector.extract_strided_slice %5 {offsets = [0, 96], sizes = [17, 32], strides = [1, 1]} : vector<17x128xbf16> to vector<17x32xbf16>
    %cst_22 = arith.constant dense<0.000000e+00> : vector<17x17xf32>
    %63 = tpu.matmul %60, %61, %cst_22 {dimension_numbers = #tpu.dot_dimension_numbers<[1], [1], [0], [0], [0, 0, 1, 0], [], []>} : vector<17x32xbf16>, vector<17x32xbf16>, vector<17x17xf32> -> vector<17x17xf32>
    %cst_23 = arith.constant 0.176776692 : f32
    %64 = vector.broadcast %cst_23 : f32 to vector<17x17xf32>
    %65 = arith.mulf %63, %64 : vector<17x17xf32>
    %cst_24 = arith.constant dense<0xFF800000> : vector<17xf32>
    %66 = vector.multi_reduction <maximumf>, %65, %cst_24 [1] : vector<17x17xf32> to vector<17xf32>
    %67 = vector.shape_cast %66 : vector<17xf32> to vector<17x1xf32>
    %68 = vector.broadcast %67 : vector<17x1xf32> to vector<17x17xf32>
    %69 = arith.subf %65, %68 : vector<17x17xf32>
    %70 = math.exp %69 : vector<17x17xf32>
    %cst_25 = arith.constant dense<0.000000e+00> : vector<17xf32>
    %71 = vector.multi_reduction <add>, %70, %cst_25 [1] : vector<17x17xf32> to vector<17xf32>
    %72 = vector.shape_cast %71 : vector<17xf32> to vector<17x1xf32>
    %73 = tpu.reciprocal %72 {approx = true} : vector<17x1xf32> -> vector<17x1xf32>
    %74 = arith.truncf %70 : vector<17x17xf32> to vector<17x17xbf16>
    %cst_26 = arith.constant dense<0.000000e+00> : vector<17x32xf32>
    %75 = tpu.matmul %74, %62, %cst_26 {dimension_numbers = #tpu.dot_dimension_numbers<[1], [0], [0], [1], [0, 0, 1, 1], [], []>} : vector<17x17xbf16>, vector<17x32xbf16>, vector<17x32xf32> -> vector<17x32xf32>
    %76 = vector.broadcast %73 : vector<17x1xf32> to vector<17x32xf32>
    %77 = arith.mulf %75, %76 : vector<17x32xf32>
    %78 = tpu.concatenate %23, %41, %59, %77 in 1 : vector<17x32xf32>, vector<17x32xf32>, vector<17x32xf32>, vector<17x32xf32> -> vector<17x128xf32>
    %79 = arith.truncf %78 : vector<17x128xf32> to vector<17x128xbf16>
    %c0_27 = arith.constant 0 : index
    %c0_28 = arith.constant 0 : index
    %c0_29 = arith.constant 0 : index
    %80 = vector.load %arg5[%c0_27, %c0_28, %c0_29] : memref<1x17x128xbf16, #tpu.memory_space<vmem>>, vector<1x17x128xbf16>
    %81 = vector.shape_cast %80 : vector<1x17x128xbf16> to vector<17x128xbf16>
    %82 = vector.shape_cast %79 : vector<17x128xbf16> to vector<1x17x128xbf16>
    tpu.vector_store %arg5[%c0_27, %c0_28, %c0_29], %82 {strides = array<i32>} : memref<1x17x128xbf16, #tpu.memory_space<vmem>>, vector<1x17x128xbf16>,
    return
  }
  func.func @transform_0(%arg0: i32, %arg1: i32) -> (i32, i32, i32) {
    %c0_i32 = arith.constant 0 : i32
    %0 = arith.addi %c0_i32, %arg1 : i32
    %c0_i32_0 = arith.constant 0 : i32
    %c0_i32_1 = arith.constant 0 : i32
    return %arg0, %c0_i32_0, %0 : i32, i32, i32
  }
  func.func @transform_1(%arg0: i32, %arg1: i32) -> (i32, i32, i32) {
    %c1_i32 = arith.constant 1 : i32
    %0 = arith.addi %c1_i32, %arg1 : i32
    %c0_i32 = arith.constant 0 : i32
    %c0_i32_0 = arith.constant 0 : i32
    return %arg0, %c0_i32, %0 : i32, i32, i32
  }
  func.func @transform_2(%arg0: i32, %arg1: i32) -> (i32, i32, i32) {
    %c2_i32 = arith.constant 2 : i32
    %0 = arith.addi %c2_i32, %arg1 : i32
    %c0_i32 = arith.constant 0 : i32
    %c0_i32_0 = arith.constant 0 : i32
    return %arg0, %c0_i32, %0 : i32, i32, i32
  }
  func.func @transform_3(%arg0: i32, %arg1: i32) -> (i32, i32, i32) {
    %c0_i32 = arith.constant 0 : i32
    %c0_i32_0 = arith.constant 0 : i32
    return %arg0, %c0_i32, %arg1 : i32, i32, i32
  }
}

module attributes {stable_mosaic.version = 11 : i64} {
  func.func @_ln_matmul_kernel(%arg0: i32, %arg1: i32, %arg2: memref<34x128xbf16, #tpu.memory_space<vmem>>, %arg3: memref<1x128xf32, #tpu.memory_space<vmem>>, %arg4: memref<1x128xf32, #tpu.memory_space<vmem>>, %arg5: memref<128x128xbf16, #tpu.memory_space<vmem>>, %arg6: memref<1x128xf32, #tpu.memory_space<vmem>>, %arg7: memref<34x128xbf16, #tpu.memory_space<vmem>>, %arg8: memref<34x128xbf16, #tpu.memory_space<vmem>>) attributes {dimension_semantics = [#tpu.dimension_semantics<parallel>, #tpu.dimension_semantics<arbitrary>], iteration_bounds = array<i64: 1, 3>, scalar_prefetch = 0 : i64, scratch_operands = 1 : i64, tpu.core_type = #tpu.core_type<tc>, window_params = [{transform_indices = @transform_0, window_bounds = array<i64: 34, 128>}, {pipeline_mode = #tpu.pipeline_mode<synchronous>, transform_indices = @transform_1, window_bounds = array<i64: 1, 128>}, {pipeline_mode = #tpu.pipeline_mode<synchronous>, transform_indices = @transform_2, window_bounds = array<i64: 1, 128>}, {transform_indices = @transform_3, window_bounds = array<i64: 128, 128>}, {transform_indices = @transform_4, window_bounds = array<i64: 1, 128>}, {transform_indices = @transform_5, window_bounds = array<i64: 34, 128>}]} {
    %c0_i32 = arith.constant 0 : i32
    %0 = arith.cmpi eq, %arg1, %c0_i32 : i32
    %1 = arith.extui %0 : i1 to i32
    %c0_i32_0 = arith.constant 0 : i32
    %2 = arith.cmpi ne, %1, %c0_i32_0 : i32
    scf.if %2 {
      %c0_8 = arith.constant 0 : index
      %c0_9 = arith.constant 0 : index
      %11 = vector.load %arg2[%c0_8, %c0_9] : memref<34x128xbf16, #tpu.memory_space<vmem>>, vector<34x128xbf16>
      %12 = arith.extf %11 : vector<34x128xbf16> to vector<34x128xf32>
      %cst_10 = arith.constant dense<0.000000e+00> : vector<34xf32>
      %13 = vector.multi_reduction <add>, %12, %cst_10 [1] : vector<34x128xf32> to vector<34xf32>
      %14 = vector.shape_cast %13 : vector<34xf32> to vector<34x1xf32>
      %cst_11 = arith.constant 1.280000e+02 : f32
      %15 = vector.broadcast %cst_11 : f32 to vector<34x1xf32>
      %16 = arith.divf %14, %15 : vector<34x1xf32>
      %17 = vector.broadcast %16 : vector<34x1xf32> to vector<34x128xf32>
      %18 = arith.subf %12, %17 : vector<34x128xf32>
      %19 = arith.mulf %18, %18 : vector<34x128xf32>
      %cst_12 = arith.constant dense<0.000000e+00> : vector<34xf32>
      %20 = vector.multi_reduction <add>, %19, %cst_12 [1] : vector<34x128xf32> to vector<34xf32>
      %21 = vector.shape_cast %20 : vector<34xf32> to vector<34x1xf32>
      %cst_13 = arith.constant 1.280000e+02 : f32
      %22 = vector.broadcast %cst_13 : f32 to vector<34x1xf32>
      %23 = arith.divf %21, %22 : vector<34x1xf32>
      %24 = vector.broadcast %16 : vector<34x1xf32> to vector<34x128xf32>
      %25 = arith.subf %12, %24 : vector<34x128xf32>
      %cst_14 = arith.constant 9.99999974E-6 : f32
      %26 = vector.broadcast %cst_14 : f32 to vector<34x1xf32>
      %27 = arith.addf %23, %26 : vector<34x1xf32>
      %28 = math.rsqrt %27 : vector<34x1xf32>
      %29 = vector.broadcast %28 : vector<34x1xf32> to vector<34x128xf32>
      %30 = arith.mulf %25, %29 : vector<34x128xf32>
      %c0_15 = arith.constant 0 : index
      %c0_16 = arith.constant 0 : index
      %31 = vector.load %arg3[%c0_15, %c0_16] : memref<1x128xf32, #tpu.memory_space<vmem>>, vector<1x128xf32>
      %32 = vector.broadcast %31 : vector<1x128xf32> to vector<34x128xf32>
      %33 = arith.mulf %30, %32 : vector<34x128xf32>
      %c0_17 = arith.constant 0 : index
      %c0_18 = arith.constant 0 : index
      %34 = vector.load %arg4[%c0_17, %c0_18] : memref<1x128xf32, #tpu.memory_space<vmem>>, vector<1x128xf32>
      %35 = vector.broadcast %34 : vector<1x128xf32> to vector<34x128xf32>
      %36 = arith.addf %33, %35 : vector<34x128xf32>
      %37 = arith.truncf %36 : vector<34x128xf32> to vector<34x128xbf16>
      %c0_19 = arith.constant 0 : index
      %c0_20 = arith.constant 0 : index
      %38 = vector.load %arg8[%c0_19, %c0_20] : memref<34x128xbf16, #tpu.memory_space<vmem>>, vector<34x128xbf16>
      tpu.vector_store %arg8[%c0_19, %c0_20], %37 {strides = array<i32>} : memref<34x128xbf16, #tpu.memory_space<vmem>>, vector<34x128xbf16>,
    } else {
    }
    %c0 = arith.constant 0 : index
    %c0_1 = arith.constant 0 : index
    %3 = vector.load %arg8[%c0, %c0_1] : memref<34x128xbf16, #tpu.memory_space<vmem>>, vector<34x128xbf16>
    %c0_2 = arith.constant 0 : index
    %c0_3 = arith.constant 0 : index
    %4 = vector.load %arg5[%c0_2, %c0_3] : memref<128x128xbf16, #tpu.memory_space<vmem>>, vector<128x128xbf16>
    %cst = arith.constant dense<0.000000e+00> : vector<34x128xf32>
    %5 = tpu.matmul %3, %4, %cst {dimension_numbers = #tpu.dot_dimension_numbers<[1], [0], [0], [1], [0, 0, 1, 1], [], []>} : vector<34x128xbf16>, vector<128x128xbf16>, vector<34x128xf32> -> vector<34x128xf32>
    %c0_4 = arith.constant 0 : index
    %c0_5 = arith.constant 0 : index
    %6 = vector.load %arg6[%c0_4, %c0_5] : memref<1x128xf32, #tpu.memory_space<vmem>>, vector<1x128xf32>
    %7 = vector.broadcast %6 : vector<1x128xf32> to vector<34x128xf32>
    %8 = arith.addf %5, %7 : vector<34x128xf32>
    %9 = arith.truncf %8 : vector<34x128xf32> to vector<34x128xbf16>
    %c0_6 = arith.constant 0 : index
    %c0_7 = arith.constant 0 : index
    %10 = vector.load %arg7[%c0_6, %c0_7] : memref<34x128xbf16, #tpu.memory_space<vmem>>, vector<34x128xbf16>
    tpu.vector_store %arg7[%c0_6, %c0_7], %9 {strides = array<i32>} : memref<34x128xbf16, #tpu.memory_space<vmem>>, vector<34x128xbf16>,
    return
  }
  func.func @transform_0(%arg0: i32, %arg1: i32) -> (i32, i32) {
    %c0_i32 = arith.constant 0 : i32
    %c0_i32_0 = arith.constant 0 : i32
    return %arg0, %c0_i32 : i32, i32
  }
  func.func @transform_1(%arg0: i32, %arg1: i32) -> (i32, i32) {
    %c0_i32 = arith.constant 0 : i32
    %c0_i32_0 = arith.constant 0 : i32
    %c0_i32_1 = arith.constant 0 : i32
    return %c0_i32, %c0_i32_0 : i32, i32
  }
  func.func @transform_2(%arg0: i32, %arg1: i32) -> (i32, i32) {
    %c0_i32 = arith.constant 0 : i32
    %c0_i32_0 = arith.constant 0 : i32
    %c0_i32_1 = arith.constant 0 : i32
    return %c0_i32, %c0_i32_0 : i32, i32
  }
  func.func @transform_3(%arg0: i32, %arg1: i32) -> (i32, i32) {
    %c0_i32 = arith.constant 0 : i32
    %c0_i32_0 = arith.constant 0 : i32
    return %c0_i32, %arg1 : i32, i32
  }
  func.func @transform_4(%arg0: i32, %arg1: i32) -> (i32, i32) {
    %c0_i32 = arith.constant 0 : i32
    %c0_i32_0 = arith.constant 0 : i32
    return %c0_i32, %arg1 : i32, i32
  }
  func.func @transform_5(%arg0: i32, %arg1: i32) -> (i32, i32) {
    %c0_i32 = arith.constant 0 : i32
    return %arg0, %arg1 : i32, i32
  }
}

module attributes {stable_mosaic.version = 11 : i64} {
  func.func @_matmul_res_kernel(%arg0: i32, %arg1: i32, %arg2: i32, %arg3: memref<34x256xbf16, #tpu.memory_space<vmem>>, %arg4: memref<256x128xbf16, #tpu.memory_space<vmem>>, %arg5: memref<1x128xf32, #tpu.memory_space<vmem>>, %arg6: memref<34x128xbf16, #tpu.memory_space<vmem>>, %arg7: memref<34x128xbf16, #tpu.memory_space<vmem>>, %arg8: memref<34x128xf32, #tpu.memory_space<vmem>>) attributes {dimension_semantics = [#tpu.dimension_semantics<parallel>, #tpu.dimension_semantics<parallel>, #tpu.dimension_semantics<arbitrary>], iteration_bounds = array<i64: 1, 1, 1>, scalar_prefetch = 0 : i64, scratch_operands = 1 : i64, tpu.core_type = #tpu.core_type<tc>, window_params = [{transform_indices = @transform_0, window_bounds = array<i64: 34, 256>}, {transform_indices = @transform_1, window_bounds = array<i64: 256, 128>}, {transform_indices = @transform_2, window_bounds = array<i64: 1, 128>}, {transform_indices = @transform_3, window_bounds = array<i64: 34, 128>}, {transform_indices = @transform_4, window_bounds = array<i64: 34, 128>}]} {
    %c0_i32 = arith.constant 0 : i32
    %0 = arith.cmpi eq, %arg2, %c0_i32 : i32
    %1 = arith.extui %0 : i1 to i32
    %c0_i32_0 = arith.constant 0 : i32
    %2 = arith.cmpi ne, %1, %c0_i32_0 : i32
    scf.if %2 {
      %cst_10 = arith.constant 0.000000e+00 : f32
      %12 = vector.broadcast %cst_10 : f32 to vector<34x128xf32>
      %c0_11 = arith.constant 0 : index
      %c0_12 = arith.constant 0 : index
      %13 = vector.load %arg8[%c0_11, %c0_12] : memref<34x128xf32, #tpu.memory_space<vmem>>, vector<34x128xf32>
      tpu.vector_store %arg8[%c0_11, %c0_12], %12 {strides = array<i32>} : memref<34x128xf32, #tpu.memory_space<vmem>>, vector<34x128xf32>,
    } else {
    }
    %c0 = arith.constant 0 : index
    %c0_1 = arith.constant 0 : index
    %3 = vector.load %arg8[%c0, %c0_1] : memref<34x128xf32, #tpu.memory_space<vmem>>, vector<34x128xf32>
    %c0_2 = arith.constant 0 : index
    %c0_3 = arith.constant 0 : index
    %4 = vector.load %arg3[%c0_2, %c0_3] : memref<34x256xbf16, #tpu.memory_space<vmem>>, vector<34x256xbf16>
    %c0_4 = arith.constant 0 : index
    %c0_5 = arith.constant 0 : index
    %5 = vector.load %arg4[%c0_4, %c0_5] : memref<256x128xbf16, #tpu.memory_space<vmem>>, vector<256x128xbf16>
    %cst = arith.constant dense<0.000000e+00> : vector<34x128xf32>
    %6 = tpu.matmul %4, %5, %cst {dimension_numbers = #tpu.dot_dimension_numbers<[1], [0], [0], [1], [0, 0, 1, 1], [], []>} : vector<34x256xbf16>, vector<256x128xbf16>, vector<34x128xf32> -> vector<34x128xf32>
    %7 = arith.addf %3, %6 : vector<34x128xf32>
    %c0_6 = arith.constant 0 : index
    %c0_7 = arith.constant 0 : index
    %8 = vector.load %arg8[%c0_6, %c0_7] : memref<34x128xf32, #tpu.memory_space<vmem>>, vector<34x128xf32>
    tpu.vector_store %arg8[%c0_6, %c0_7], %7 {strides = array<i32>} : memref<34x128xf32, #tpu.memory_space<vmem>>, vector<34x128xf32>,
    %c0_i32_8 = arith.constant 0 : i32
    %9 = arith.cmpi eq, %arg2, %c0_i32_8 : i32
    %10 = arith.extui %9 : i1 to i32
    %c0_i32_9 = arith.constant 0 : i32
    %11 = arith.cmpi ne, %10, %c0_i32_9 : i32
    scf.if %11 {
      %c0_10 = arith.constant 0 : index
      %c0_11 = arith.constant 0 : index
      %12 = vector.load %arg8[%c0_10, %c0_11] : memref<34x128xf32, #tpu.memory_space<vmem>>, vector<34x128xf32>
      %c0_12 = arith.constant 0 : index
      %c0_13 = arith.constant 0 : index
      %13 = vector.load %arg5[%c0_12, %c0_13] : memref<1x128xf32, #tpu.memory_space<vmem>>, vector<1x128xf32>
      %14 = vector.broadcast %13 : vector<1x128xf32> to vector<34x128xf32>
      %15 = arith.addf %12, %14 : vector<34x128xf32>
      %c0_14 = arith.constant 0 : index
      %c0_15 = arith.constant 0 : index
      %16 = vector.load %arg6[%c0_14, %c0_15] : memref<34x128xbf16, #tpu.memory_space<vmem>>, vector<34x128xbf16>
      %17 = arith.extf %16 : vector<34x128xbf16> to vector<34x128xf32>
      %18 = arith.addf %15, %17 : vector<34x128xf32>
      %19 = arith.truncf %18 : vector<34x128xf32> to vector<34x128xbf16>
      %c0_16 = arith.constant 0 : index
      %c0_17 = arith.constant 0 : index
      %20 = vector.load %arg7[%c0_16, %c0_17] : memref<34x128xbf16, #tpu.memory_space<vmem>>, vector<34x128xbf16>
      tpu.vector_store %arg7[%c0_16, %c0_17], %19 {strides = array<i32>} : memref<34x128xbf16, #tpu.memory_space<vmem>>, vector<34x128xbf16>,
    } else {
    }
    return
  }
  func.func @transform_0(%arg0: i32, %arg1: i32, %arg2: i32) -> (i32, i32) {
    %c0_i32 = arith.constant 0 : i32
    return %arg0, %arg2 : i32, i32
  }
  func.func @transform_1(%arg0: i32, %arg1: i32, %arg2: i32) -> (i32, i32) {
    %c0_i32 = arith.constant 0 : i32
    return %arg2, %arg1 : i32, i32
  }
  func.func @transform_2(%arg0: i32, %arg1: i32, %arg2: i32) -> (i32, i32) {
    %c0_i32 = arith.constant 0 : i32
    %c0_i32_0 = arith.constant 0 : i32
    return %c0_i32, %arg1 : i32, i32
  }
  func.func @transform_3(%arg0: i32, %arg1: i32, %arg2: i32) -> (i32, i32) {
    %c0_i32 = arith.constant 0 : i32
    return %arg0, %arg1 : i32, i32
  }
  func.func @transform_4(%arg0: i32, %arg1: i32, %arg2: i32) -> (i32, i32) {
    %c0_i32 = arith.constant 0 : i32
    return %arg0, %arg1 : i32, i32
  }
}

module attributes {stable_mosaic.version = 11 : i64} {
  func.func @_ln_matmul_kernel(%arg0: i32, %arg1: i32, %arg2: memref<34x128xbf16, #tpu.memory_space<vmem>>, %arg3: memref<1x128xf32, #tpu.memory_space<vmem>>, %arg4: memref<1x128xf32, #tpu.memory_space<vmem>>, %arg5: memref<128x256xbf16, #tpu.memory_space<vmem>>, %arg6: memref<1x256xf32, #tpu.memory_space<vmem>>, %arg7: memref<34x256xbf16, #tpu.memory_space<vmem>>, %arg8: memref<34x128xbf16, #tpu.memory_space<vmem>>) attributes {dimension_semantics = [#tpu.dimension_semantics<parallel>, #tpu.dimension_semantics<arbitrary>], iteration_bounds = array<i64: 1, 1>, scalar_prefetch = 0 : i64, scratch_operands = 1 : i64, tpu.core_type = #tpu.core_type<tc>, window_params = [{transform_indices = @transform_0, window_bounds = array<i64: 34, 128>}, {pipeline_mode = #tpu.pipeline_mode<synchronous>, transform_indices = @transform_1, window_bounds = array<i64: 1, 128>}, {pipeline_mode = #tpu.pipeline_mode<synchronous>, transform_indices = @transform_2, window_bounds = array<i64: 1, 128>}, {transform_indices = @transform_3, window_bounds = array<i64: 128, 256>}, {transform_indices = @transform_4, window_bounds = array<i64: 1, 256>}, {transform_indices = @transform_5, window_bounds = array<i64: 34, 256>}]} {
    %c0_i32 = arith.constant 0 : i32
    %0 = arith.cmpi eq, %arg1, %c0_i32 : i32
    %1 = arith.extui %0 : i1 to i32
    %c0_i32_0 = arith.constant 0 : i32
    %2 = arith.cmpi ne, %1, %c0_i32_0 : i32
    scf.if %2 {
      %c0_11 = arith.constant 0 : index
      %c0_12 = arith.constant 0 : index
      %19 = vector.load %arg2[%c0_11, %c0_12] : memref<34x128xbf16, #tpu.memory_space<vmem>>, vector<34x128xbf16>
      %20 = arith.extf %19 : vector<34x128xbf16> to vector<34x128xf32>
      %cst_13 = arith.constant dense<0.000000e+00> : vector<34xf32>
      %21 = vector.multi_reduction <add>, %20, %cst_13 [1] : vector<34x128xf32> to vector<34xf32>
      %22 = vector.shape_cast %21 : vector<34xf32> to vector<34x1xf32>
      %cst_14 = arith.constant 1.280000e+02 : f32
      %23 = vector.broadcast %cst_14 : f32 to vector<34x1xf32>
      %24 = arith.divf %22, %23 : vector<34x1xf32>
      %25 = vector.broadcast %24 : vector<34x1xf32> to vector<34x128xf32>
      %26 = arith.subf %20, %25 : vector<34x128xf32>
      %27 = arith.mulf %26, %26 : vector<34x128xf32>
      %cst_15 = arith.constant dense<0.000000e+00> : vector<34xf32>
      %28 = vector.multi_reduction <add>, %27, %cst_15 [1] : vector<34x128xf32> to vector<34xf32>
      %29 = vector.shape_cast %28 : vector<34xf32> to vector<34x1xf32>
      %cst_16 = arith.constant 1.280000e+02 : f32
      %30 = vector.broadcast %cst_16 : f32 to vector<34x1xf32>
      %31 = arith.divf %29, %30 : vector<34x1xf32>
      %32 = vector.broadcast %24 : vector<34x1xf32> to vector<34x128xf32>
      %33 = arith.subf %20, %32 : vector<34x128xf32>
      %cst_17 = arith.constant 9.99999974E-6 : f32
      %34 = vector.broadcast %cst_17 : f32 to vector<34x1xf32>
      %35 = arith.addf %31, %34 : vector<34x1xf32>
      %36 = math.rsqrt %35 : vector<34x1xf32>
      %37 = vector.broadcast %36 : vector<34x1xf32> to vector<34x128xf32>
      %38 = arith.mulf %33, %37 : vector<34x128xf32>
      %c0_18 = arith.constant 0 : index
      %c0_19 = arith.constant 0 : index
      %39 = vector.load %arg3[%c0_18, %c0_19] : memref<1x128xf32, #tpu.memory_space<vmem>>, vector<1x128xf32>
      %40 = vector.broadcast %39 : vector<1x128xf32> to vector<34x128xf32>
      %41 = arith.mulf %38, %40 : vector<34x128xf32>
      %c0_20 = arith.constant 0 : index
      %c0_21 = arith.constant 0 : index
      %42 = vector.load %arg4[%c0_20, %c0_21] : memref<1x128xf32, #tpu.memory_space<vmem>>, vector<1x128xf32>
      %43 = vector.broadcast %42 : vector<1x128xf32> to vector<34x128xf32>
      %44 = arith.addf %41, %43 : vector<34x128xf32>
      %45 = arith.truncf %44 : vector<34x128xf32> to vector<34x128xbf16>
      %c0_22 = arith.constant 0 : index
      %c0_23 = arith.constant 0 : index
      %46 = vector.load %arg8[%c0_22, %c0_23] : memref<34x128xbf16, #tpu.memory_space<vmem>>, vector<34x128xbf16>
      tpu.vector_store %arg8[%c0_22, %c0_23], %45 {strides = array<i32>} : memref<34x128xbf16, #tpu.memory_space<vmem>>, vector<34x128xbf16>,
    } else {
    }
    %c0 = arith.constant 0 : index
    %c0_1 = arith.constant 0 : index
    %3 = vector.load %arg8[%c0, %c0_1] : memref<34x128xbf16, #tpu.memory_space<vmem>>, vector<34x128xbf16>
    %c0_2 = arith.constant 0 : index
    %c0_3 = arith.constant 0 : index
    %4 = vector.load %arg5[%c0_2, %c0_3] : memref<128x256xbf16, #tpu.memory_space<vmem>>, vector<128x256xbf16>
    %cst = arith.constant dense<0.000000e+00> : vector<34x256xf32>
    %5 = tpu.matmul %3, %4, %cst {dimension_numbers = #tpu.dot_dimension_numbers<[1], [0], [0], [1], [0, 0, 1, 1], [], []>} : vector<34x128xbf16>, vector<128x256xbf16>, vector<34x256xf32> -> vector<34x256xf32>
    %c0_4 = arith.constant 0 : index
    %c0_5 = arith.constant 0 : index
    %6 = vector.load %arg6[%c0_4, %c0_5] : memref<1x256xf32, #tpu.memory_space<vmem>>, vector<1x256xf32>
    %7 = vector.broadcast %6 : vector<1x256xf32> to vector<34x256xf32>
    %8 = arith.addf %5, %7 : vector<34x256xf32>
    %cst_6 = arith.constant 5.000000e-01 : f32
    %9 = vector.broadcast %cst_6 : f32 to vector<34x256xf32>
    %10 = arith.mulf %9, %8 : vector<34x256xf32>
    %cst_7 = arith.constant 0.707106769 : f32
    %11 = vector.broadcast %cst_7 : f32 to vector<34x256xf32>
    %12 = arith.mulf %8, %11 : vector<34x256xf32>
    %13 = math.erf %12 : vector<34x256xf32>
    %cst_8 = arith.constant 1.000000e+00 : f32
    %14 = vector.broadcast %cst_8 : f32 to vector<34x256xf32>
    %15 = arith.addf %14, %13 : vector<34x256xf32>
    %16 = arith.mulf %10, %15 : vector<34x256xf32>
    %17 = arith.truncf %16 : vector<34x256xf32> to vector<34x256xbf16>
    %c0_9 = arith.constant 0 : index
    %c0_10 = arith.constant 0 : index
    %18 = vector.load %arg7[%c0_9, %c0_10] : memref<34x256xbf16, #tpu.memory_space<vmem>>, vector<34x256xbf16>
    tpu.vector_store %arg7[%c0_9, %c0_10], %17 {strides = array<i32>} : memref<34x256xbf16, #tpu.memory_space<vmem>>, vector<34x256xbf16>,
    return
  }
  func.func @transform_0(%arg0: i32, %arg1: i32) -> (i32, i32) {
    %c0_i32 = arith.constant 0 : i32
    %c0_i32_0 = arith.constant 0 : i32
    return %arg0, %c0_i32 : i32, i32
  }
  func.func @transform_1(%arg0: i32, %arg1: i32) -> (i32, i32) {
    %c0_i32 = arith.constant 0 : i32
    %c0_i32_0 = arith.constant 0 : i32
    %c0_i32_1 = arith.constant 0 : i32
    return %c0_i32, %c0_i32_0 : i32, i32
  }
  func.func @transform_2(%arg0: i32, %arg1: i32) -> (i32, i32) {
    %c0_i32 = arith.constant 0 : i32
    %c0_i32_0 = arith.constant 0 : i32
    %c0_i32_1 = arith.constant 0 : i32
    return %c0_i32, %c0_i32_0 : i32, i32
  }
  func.func @transform_3(%arg0: i32, %arg1: i32) -> (i32, i32) {
    %c0_i32 = arith.constant 0 : i32
    %c0_i32_0 = arith.constant 0 : i32
    return %c0_i32, %arg1 : i32, i32
  }
  func.func @transform_4(%arg0: i32, %arg1: i32) -> (i32, i32) {
    %c0_i32 = arith.constant 0 : i32
    %c0_i32_0 = arith.constant 0 : i32
    return %c0_i32, %arg1 : i32, i32
  }
  func.func @transform_5(%arg0: i32, %arg1: i32) -> (i32, i32) {
    %c0_i32 = arith.constant 0 : i32
    return %arg0, %arg1 : i32, i32
  }
}

module attributes {stable_mosaic.version = 11 : i64} {
  func.func @_ln_matmul_kernel(%arg0: i32, %arg1: i32, %arg2: memref<2x128xbf16, #tpu.memory_space<vmem>>, %arg3: memref<1x128xf32, #tpu.memory_space<vmem>>, %arg4: memref<1x128xf32, #tpu.memory_space<vmem>>, %arg5: memref<128x128xbf16, #tpu.memory_space<vmem>>, %arg6: memref<1x128xf32, #tpu.memory_space<vmem>>, %arg7: memref<2x128xf32, #tpu.memory_space<vmem>>, %arg8: memref<2x128xbf16, #tpu.memory_space<vmem>>) attributes {dimension_semantics = [#tpu.dimension_semantics<parallel>, #tpu.dimension_semantics<arbitrary>], iteration_bounds = array<i64: 1, 1>, scalar_prefetch = 0 : i64, scratch_operands = 1 : i64, tpu.core_type = #tpu.core_type<tc>, window_params = [{transform_indices = @transform_0, window_bounds = array<i64: 2, 128>}, {pipeline_mode = #tpu.pipeline_mode<synchronous>, transform_indices = @transform_1, window_bounds = array<i64: 1, 128>}, {pipeline_mode = #tpu.pipeline_mode<synchronous>, transform_indices = @transform_2, window_bounds = array<i64: 1, 128>}, {transform_indices = @transform_3, window_bounds = array<i64: 128, 128>}, {transform_indices = @transform_4, window_bounds = array<i64: 1, 128>}, {transform_indices = @transform_5, window_bounds = array<i64: 2, 128>}]} {
    %c0_i32 = arith.constant 0 : i32
    %0 = arith.cmpi eq, %arg1, %c0_i32 : i32
    %1 = arith.extui %0 : i1 to i32
    %c0_i32_0 = arith.constant 0 : i32
    %2 = arith.cmpi ne, %1, %c0_i32_0 : i32
    scf.if %2 {
      %c0_8 = arith.constant 0 : index
      %c0_9 = arith.constant 0 : index
      %10 = vector.load %arg2[%c0_8, %c0_9] : memref<2x128xbf16, #tpu.memory_space<vmem>>, vector<2x128xbf16>
      %11 = arith.extf %10 : vector<2x128xbf16> to vector<2x128xf32>
      %cst_10 = arith.constant dense<0.000000e+00> : vector<2xf32>
      %12 = vector.multi_reduction <add>, %11, %cst_10 [1] : vector<2x128xf32> to vector<2xf32>
      %13 = vector.shape_cast %12 : vector<2xf32> to vector<2x1xf32>
      %cst_11 = arith.constant 1.280000e+02 : f32
      %14 = vector.broadcast %cst_11 : f32 to vector<2x1xf32>
      %15 = arith.divf %13, %14 : vector<2x1xf32>
      %16 = vector.broadcast %15 : vector<2x1xf32> to vector<2x128xf32>
      %17 = arith.subf %11, %16 : vector<2x128xf32>
      %18 = arith.mulf %17, %17 : vector<2x128xf32>
      %cst_12 = arith.constant dense<0.000000e+00> : vector<2xf32>
      %19 = vector.multi_reduction <add>, %18, %cst_12 [1] : vector<2x128xf32> to vector<2xf32>
      %20 = vector.shape_cast %19 : vector<2xf32> to vector<2x1xf32>
      %cst_13 = arith.constant 1.280000e+02 : f32
      %21 = vector.broadcast %cst_13 : f32 to vector<2x1xf32>
      %22 = arith.divf %20, %21 : vector<2x1xf32>
      %23 = vector.broadcast %15 : vector<2x1xf32> to vector<2x128xf32>
      %24 = arith.subf %11, %23 : vector<2x128xf32>
      %cst_14 = arith.constant 9.99999974E-6 : f32
      %25 = vector.broadcast %cst_14 : f32 to vector<2x1xf32>
      %26 = arith.addf %22, %25 : vector<2x1xf32>
      %27 = math.rsqrt %26 : vector<2x1xf32>
      %28 = vector.broadcast %27 : vector<2x1xf32> to vector<2x128xf32>
      %29 = arith.mulf %24, %28 : vector<2x128xf32>
      %c0_15 = arith.constant 0 : index
      %c0_16 = arith.constant 0 : index
      %30 = vector.load %arg3[%c0_15, %c0_16] : memref<1x128xf32, #tpu.memory_space<vmem>>, vector<1x128xf32>
      %31 = vector.broadcast %30 : vector<1x128xf32> to vector<2x128xf32>
      %32 = arith.mulf %29, %31 : vector<2x128xf32>
      %c0_17 = arith.constant 0 : index
      %c0_18 = arith.constant 0 : index
      %33 = vector.load %arg4[%c0_17, %c0_18] : memref<1x128xf32, #tpu.memory_space<vmem>>, vector<1x128xf32>
      %34 = vector.broadcast %33 : vector<1x128xf32> to vector<2x128xf32>
      %35 = arith.addf %32, %34 : vector<2x128xf32>
      %36 = arith.truncf %35 : vector<2x128xf32> to vector<2x128xbf16>
      %c0_19 = arith.constant 0 : index
      %c0_20 = arith.constant 0 : index
      %37 = vector.load %arg8[%c0_19, %c0_20] : memref<2x128xbf16, #tpu.memory_space<vmem>>, vector<2x128xbf16>
      tpu.vector_store %arg8[%c0_19, %c0_20], %36 {strides = array<i32>} : memref<2x128xbf16, #tpu.memory_space<vmem>>, vector<2x128xbf16>,
    } else {
    }
    %c0 = arith.constant 0 : index
    %c0_1 = arith.constant 0 : index
    %3 = vector.load %arg8[%c0, %c0_1] : memref<2x128xbf16, #tpu.memory_space<vmem>>, vector<2x128xbf16>
    %c0_2 = arith.constant 0 : index
    %c0_3 = arith.constant 0 : index
    %4 = vector.load %arg5[%c0_2, %c0_3] : memref<128x128xbf16, #tpu.memory_space<vmem>>, vector<128x128xbf16>
    %cst = arith.constant dense<0.000000e+00> : vector<2x128xf32>
    %5 = tpu.matmul %3, %4, %cst {dimension_numbers = #tpu.dot_dimension_numbers<[1], [0], [0], [1], [0, 0, 1, 1], [], []>} : vector<2x128xbf16>, vector<128x128xbf16>, vector<2x128xf32> -> vector<2x128xf32>
    %c0_4 = arith.constant 0 : index
    %c0_5 = arith.constant 0 : index
    %6 = vector.load %arg6[%c0_4, %c0_5] : memref<1x128xf32, #tpu.memory_space<vmem>>, vector<1x128xf32>
    %7 = vector.broadcast %6 : vector<1x128xf32> to vector<2x128xf32>
    %8 = arith.addf %5, %7 : vector<2x128xf32>
    %c0_6 = arith.constant 0 : index
    %c0_7 = arith.constant 0 : index
    %9 = vector.load %arg7[%c0_6, %c0_7] : memref<2x128xf32, #tpu.memory_space<vmem>>, vector<2x128xf32>
    tpu.vector_store %arg7[%c0_6, %c0_7], %8 {strides = array<i32>} : memref<2x128xf32, #tpu.memory_space<vmem>>, vector<2x128xf32>,
    return
  }
  func.func @transform_0(%arg0: i32, %arg1: i32) -> (i32, i32) {
    %c0_i32 = arith.constant 0 : i32
    %c0_i32_0 = arith.constant 0 : i32
    return %arg0, %c0_i32 : i32, i32
  }
  func.func @transform_1(%arg0: i32, %arg1: i32) -> (i32, i32) {
    %c0_i32 = arith.constant 0 : i32
    %c0_i32_0 = arith.constant 0 : i32
    %c0_i32_1 = arith.constant 0 : i32
    return %c0_i32, %c0_i32_0 : i32, i32
  }
  func.func @transform_2(%arg0: i32, %arg1: i32) -> (i32, i32) {
    %c0_i32 = arith.constant 0 : i32
    %c0_i32_0 = arith.constant 0 : i32
    %c0_i32_1 = arith.constant 0 : i32
    return %c0_i32, %c0_i32_0 : i32, i32
  }
  func.func @transform_3(%arg0: i32, %arg1: i32) -> (i32, i32) {
    %c0_i32 = arith.constant 0 : i32
    %c0_i32_0 = arith.constant 0 : i32
    return %c0_i32, %arg1 : i32, i32
  }
  func.func @transform_4(%arg0: i32, %arg1: i32) -> (i32, i32) {
    %c0_i32 = arith.constant 0 : i32
    %c0_i32_0 = arith.constant 0 : i32
    return %c0_i32, %arg1 : i32, i32
  }
  func.func @transform_5(%arg0: i32, %arg1: i32) -> (i32, i32) {
    %c0_i32 = arith.constant 0 : i32
    return %arg0, %arg1 : i32, i32
  }
}

</mosaic_0001>

<bundles_post_ra>
// kernel: vit_forward.12
= control target key start
LH: loop header
LB: loop body
LE: loop exit
PB: predicated region body
PF: predicated region fallthrough
CT: control target
= control target key end

     0   :  { %vm65_vm0 = vcmask 392192   ;;  %s262_s1 = inlined_call_operand.vmem [shape: bf16[48,128], index: 1, kind: input, shape index: {}]   ;;  %s263_s0 = inlined_call_operand.vmem [shape: bf16[32,48], index: 0, kind: input, shape index: {}]   ;;  %s264_s2 = inlined_call_operand.vmem [shape: f32[1,128], index: 2, kind: input, shape index: {}]   ;;  %s265_s3 = inlined_call_operand.vmem [shape: bf16[32,128], index: 3, kind: output, shape index: {}]  }
   0x1   :  { %v213_v0 = vld [vmem:[%s262_s1] sm:$0xff]   ;;  %v214_v1 = vld [vmem:[%s262_s1 + $0x8] sm:$0xff]   ;;  %v215_v3 = vld [vmem:[%s262_s1 + $0x10] sm:$0xff]  }
   0x2   :  { %203 = vmatprep.subr.bf16.mxu0 %v213_v0  ;;  %v216_v2 = vld [vmem:[%s263_s0] sm:$0xff]   ;;  %v217_v4 = vld [vmem:[%s263_s0 + $0x8] sm:$0xff]  }
   0x3   :  { %204 = vmatpush3.bf16.msra.mxu0 %v213_v0  ;;  %209 = vmatprep.mubr.msk.bf16.mxu0 %vm65_vm0, %v216_v2  ;;  %v178_v6 = vld [vmem:[%s264_s2] ss:$0 sm:$0xff] }
   0x4   :  { %205 = vmatprep.subr.bf16.mxu0 %v214_v1 }
   0x7   :  { %206 = vmatpush3.bf16.msra.mxu0 %v214_v1 }
   0x8   :  { %207 = vmatprep.subr.bf16.mxu0 %v215_v3 }
   0xb   :  { %208 = vmatpush3.bf16.msra.mxu0 %v215_v3 }
   0xe   :  { %210 = vmatmul.mubr.msk.bf16.vlgmr.msra.gmra.mrb[0].mxu0 %vm65_vm0, %v217_v4 }
  0xe1   :  { %v211_v5 = vpop.f32.mrb[0].mxu0 }
  0xe2   :  { %v106_v7 = vpop.f32.mrb[1].mxu0  ;;  %v145_v9 = vadd.f32 %v211_v5, %v178_v6 }
  0xe3   :  { %v212_v8 = vpop.f32.mrb[2].mxu0  ;;  %v143_v12 = vadd.f32 %v178_v6, %v106_v7 }
  0xe4   :  { %v146_v10 = vadd.f32 %v212_v8, %v178_v6  ;;  %v109_v11 = vpop.f32.mrb[3].mxu0 }
  0xe5   :  { %v144_v13 = vadd.f32 %v178_v6, %v109_v11 }
  0xe6   :  { %v195_v14 = vpack.c.bf16 %v146_v10, %v145_v9 }
  0xe7   :  { %v190_v15 = vpack.c.bf16 %v144_v13, %v143_v12 }
  0xe8   :  { %197 = vst [vmem:[%s265_s3 + $0x8] sm:$0xff] %v195_v14  }
  0xe9   :  { %191 = vst [vmem:[%s265_s3] sm:$0xff] %v190_v15  }

// kernel: vit_forward.15
= control target key start
LH: loop header
LB: loop body
LE: loop exit
PB: predicated region body
PF: predicated region fallthrough
CT: control target
= control target key end

     0   :  { %v358_v0 = vmov 0.0   ;;  %vm359_vm0 = vmmov 0   ;;  %s442_s1 = inlined_call_operand.vmem [shape: bf16[128,128], index: 1, kind: input, shape index: {}]   ;;  %s443_s0 = inlined_call_operand.vmem [shape: bf16[34,128], index: 0, kind: input, shape index: {}]   ;;  %s444_s3 = inlined_call_operand.vmem [shape: bf16[34,128], index: 3, kind: input, shape index: {}]   ;;  %s445_s2 = inlined_call_operand.vmem [shape: f32[1,128], index: 2, kind: input, shape index: {}]   ;;  %s446_s4 = inlined_call_operand.vmem [shape: bf16[34,128], index: 4, kind: output, shape index: {}]  }
   0x1   :  { %329 = vmatprep.subr.bf16.mxu1 %v358_v0  ;;  %26 = vst [vmem:[#allocation2 + $0x20] sm:$0x3] %v358_v0  ;;  %v347_v1 = vld [vmem:[%s442_s1] sm:$0xff]   ;;  %301 = vmatprep.subr.bf16.mxu0 %v358_v0  ;;  %v348_v2 = vld [vmem:[%s442_s1 + $0x8] sm:$0xff]   ;;  %v349_v3 = vld [vmem:[%s442_s1 + $0x10] sm:$0xff]  }
   0x2   :  { %321 = vmatprep.mubr.msk.bf16.mxu1 %vm359_vm0, %v358_v0  ;;  %317 = vmatprep.mubr.msk.bf16.mxu0 %vm359_vm0, %v358_v0  ;;  %v350_v4 = vld [vmem:[%s442_s1 + $0x18] sm:$0xff]   ;;  %v351_v5 = vld [vmem:[%s442_s1 + $0x20] sm:$0xff]   ;;  %v352_v6 = vld [vmem:[%s442_s1 + $0x28] sm:$0xff]  }
   0x3   :  { %337 = vmatpush3.bf16.msra.mxu1 %v347_v1  ;;  %302 = vmatpush3.bf16.msra.mxu0 %v347_v1  ;;  %v353_v7 = vld [vmem:[%s442_s1 + $0x30] sm:$0xff]   ;;  %v354_v8 = vld [vmem:[%s442_s1 + $0x38] sm:$0xff]   ;;  %v355_v9 = vld [vmem:[%s443_s0 + $0x8] sm:$0xff]  }
   0x4   :  { %330 = vmatprep.subr.bf16.mxu1 %v358_v0  ;;  %303 = vmatprep.subr.bf16.mxu0 %v358_v0  ;;  %v356_v10 = vld [vmem:[%s443_s0] sm:$0xff]   ;;  %v357_v11 = vld [vmem:[%s443_s0 + $0x10] ss:$0 sps:$4 sm:$0x11]   ;;  %v288_v13 = vld [vmem:[%s444_s3 + $0x8] sm:$0xff]  }
   0x5   :  { %v271_v12 = vld [vmem:[%s444_s3] sm:$0xff]   ;;  %v276_v20 = vunpack.c.l.bf16 %v288_v13  ;;  %v277_v22 = vunpack.c.h.bf16 %v288_v13  ;;  %v207_v43 = vld [vmem:[%s444_s3 + $0x10] sm:$0x1] }
   0x6   :  { %v259_v15 = vld [vmem:[%s445_s2] ss:$0 sm:$0xff]  ;;  %v272_v18 = vunpack.c.l.bf16 %v271_v12  ;;  %v273_v24 = vunpack.c.h.bf16 %v271_v12  ;;  %v212_v44 = vunpack.c.l.bf16 %v207_v43 }
   0x7   :  { %338 = vmatpush3.bf16.msra.mxu1 %v348_v2  ;;  %304 = vmatpush3.bf16.msra.mxu0 %v348_v2 }
   0x8   :  { %331 = vmatprep.subr.bf16.mxu1 %v358_v0  ;;  %305 = vmatprep.subr.bf16.mxu0 %v358_v0  ;;  %v31_v32 = vld [vmem:[#allocation2 + $0x20] sm:$0x3] }
   0xb   :  { %339 = vmatpush3.bf16.msra.mxu1 %v349_v3  ;;  %306 = vmatpush3.bf16.msra.mxu0 %v349_v3 }
   0xc   :  { %332 = vmatprep.subr.bf16.mxu1 %v358_v0  ;;  %307 = vmatprep.subr.bf16.mxu0 %v358_v0 }
   0xf   :  { %340 = vmatpush3.bf16.msra.mxu1 %v350_v4  ;;  %308 = vmatpush3.bf16.msra.mxu0 %v350_v4 }
  0x10   :  { %333 = vmatprep.subr.bf16.mxu1 %v358_v0  ;;  %309 = vmatprep.subr.bf16.mxu0 %v358_v0 }
  0x13   :  { %341 = vmatpush3.bf16.msra.mxu1 %v351_v5  ;;  %310 = vmatpush3.bf16.msra.mxu0 %v351_v5 }
  0x14   :  { %334 = vmatprep.subr.bf16.mxu1 %v358_v0  ;;  %311 = vmatprep.subr.bf16.mxu0 %v358_v0 }
  0x17   :  { %342 = vmatpush3.bf16.msra.mxu1 %v352_v6  ;;  %312 = vmatpush3.bf16.msra.mxu0 %v352_v6 }
  0x18   :  { %335 = vmatprep.subr.bf16.mxu1 %v358_v0  ;;  %313 = vmatprep.subr.bf16.mxu0 %v358_v0 }
  0x1b   :  { %343 = vmatpush3.bf16.msra.mxu1 %v353_v7  ;;  %314 = vmatpush3.bf16.msra.mxu0 %v353_v7 }
  0x1c   :  { %336 = vmatprep.subr.bf16.mxu1 %v358_v0  ;;  %315 = vmatprep.subr.bf16.mxu0 %v358_v0 }
  0x1f   :  { %344 = vmatpush3.bf16.msra.mxu1 %v354_v8  ;;  %316 = vmatpush3.bf16.msra.mxu0 %v354_v8 }
  0x22   :  { %322 = vmatmul.mubr.bf16.vlgmr.msra.gmra.mrb[0].mxu1 %v355_v9  ;;  %318 = vmatmul.mubr.bf16.vlgmr.msra.gmra.mrb[0].mxu0 %v356_v10 }
  0x23   :  { %325 = vmatprep.mubr.msk.bf16.mxu1 %vm359_vm0, %v358_v0 }
  0x2a   :  { %326 = vmatmul.mubr.bf16.gmra.mrb[4].mxu1 %v357_v11 }
  0xf5   :  { %v159_v14 = vpop.f32.mrb[0].mxu1  ;;  %v151_v16 = vpop.f32.mrb[0].mxu0 }
  0xf6   :  { %v323_v17 = vpop.f32.mrb[1].mxu1  ;;  %v319_v19 = vpop.f32.mrb[1].mxu0  ;;  %v200_v25 = vadd.f32 %v259_v15, %v159_v14  ;;  %v198_v26 = vadd.f32 %v259_v15, %v151_v16 }
  0xf7   :  { %v162_v21 = vpop.f32.mrb[2].mxu1  ;;  %v154_v23 = vpop.f32.mrb[2].mxu0 }
  0xf8   :  { %v324_v27 = vpop.f32.mrb[3].mxu1  ;;  %v320_v28 = vpop.f32.mrb[3].mxu0  ;;  %v201_v29 = vadd.f32 %v259_v15, %v162_v21  ;;  %v213_v30 = vadd.f32 %v272_v18, %v198_v26  ;;  %v199_v31 = vadd.f32 %v259_v15, %v154_v23  ;;  %v215_v33 = vadd.f32 %v276_v20, %v200_v25 }
  0xfa   :  { %v216_v34 = vadd.f32 %v277_v22, %v201_v29  ;;  %v214_v35 = vadd.f32 %v273_v24, %v199_v31 }
  0xfc   :  { %v286_v37 = vpack.c.bf16 %v216_v34, %v215_v33  ;;  %v281_v38 = vpack.c.bf16 %v214_v35, %v213_v30 }
  0xfd   :  { %v167_v36 = vpop.f32.mrb[4].mxu1 }
  0xfe   :  { %v177_v39 = vadd.f32 %v167_v36, %v31_v32  ;;  %v327_v40 = vpop.f32.mrb[5].mxu1  ;;  %289 = vst [vmem:[%s446_s4 + $0x8] sm:$0xff] %v286_v37   ;;  %282 = vst [vmem:[%s446_s4] sm:$0xff] %v281_v38  }
  0xff   :  { %v170_v41 = vpop.f32.mrb[6].mxu1 }
 0x100   :  { %182 = vst [vmem:[#allocation2 + $0x20] sm:$0x3] %v177_v39  ;;  %v328_v42 = vpop.f32.mrb[7].mxu1 }
 0x107   :  { %v190_v45 = vld [vmem:[#allocation2 + $0x20] sm:$0x3] }
 0x108   :  { %v202_v46 = vadd.f32 %v259_v15, %v190_v45 }
 0x10a   :  { %v217_v47 = vadd.f32 %v212_v44, %v202_v46 }
 0x10c   :  { %v269_v48 = vpack.c.bf16 %v217_v47, %v217_v47 }
 0x10e   :  { %243 = vst [vmem:[%s446_s4 + $0x10] sm:$0x1] %v269_v48 }

// kernel: vit_forward.13
= control target key start
LH: loop header
LB: loop body
LE: loop exit
PB: predicated region body
PF: predicated region fallthrough
CT: control target
= control target key end

     0   :  { %s1096_s18 = smov 0   ;;  %s1098_s19 = smov 0   ;;  %s1240_s0 = inlined_call_operand.vmem [shape: bf16[34,128], index: 0, kind: input, shape index: {}]   ;;  %s1241_s1 = inlined_call_operand.vmem [shape: f32[1,128], index: 1, kind: input, shape index: {}]   ;;  %s1242_s2 = inlined_call_operand.vmem [shape: f32[1,128], index: 2, kind: input, shape index: {}]   ;;  %s1243_s3 = inlined_call_operand.vmem [shape: bf16[128,384], index: 3, kind: input, shape index: {}]   ;;  %s1244_s4 = inlined_call_operand.vmem [shape: f32[1,384], index: 4, kind: input, shape index: {}]   ;;  %s1245_s5 = inlined_call_operand.vmem [shape: bf16[34,384], index: 5, kind: output, shape index: {}]  }
   0x1   :  { %s1100_s20 = smov 0   ;;  %s1102_s21 = smov 0  }
   0x2   :  { %s1104_s22 = smov 0  }
   0x3 LB: > { %s24_s23 = sadd.s32 1, %s1058_s21  ;;  %s827_s24 = sadd.s32 4294967295, %s1062_s22   ;;  %s1062_s22 = sphi %s1104_s22, %s15_s22   ;;  %s1058_s21 = sphi %s1102_s21, %s1250_s21   ;;  %s1054_s20 = sphi %s1100_s20, %s1249_s20   ;;  %s1050_s19 = sphi %s1098_s19, %s1248_s19   ;;  %s1046_s18 = sphi %s1096_s18, %s1247_s18  }
   0x4   : > { %p25_p0 = scmp.ge.s32.totalorder %s24_s23, 3  ;;  %p109_p1 = scmp.ne.s32.totalorder %s1050_s19, %s1046_s18 }
   0x5   : > { %p110_p2 = scmp.eq.s32.totalorder %s1062_s22, 0  ;;  %p167_p4 = scmp.eq.s32.totalorder %s827_s24, 2 }
   0x6   : > { %s1252_s23 = smov (%p25_p0, %s24_s23), 0  ;;  %s102_s26 = sadd.s32 1, %s1050_s19 }
   0x7   : > { %p111_p3 = por %p110_p2, %p109_p1  ;;  %s99_s25 = ssub.s32 %s1058_s21, %s1252_s23 }
   0x8   : > { %p100_p5 = scmp.eq.s32.totalorder %s99_s25, 0  ;;  %p1131_p6 = por %p167_p4, %p109_p1 }
   0x9   : > { %p831_p7 = scmp.ge.s32.totalorder %s1062_s22, 3 }
   0xa   : > { %s1136_s28 = scalar_select %p100_p5, %s1050_s19, %s102_s26  }
   0xb   : > { %204 = sbr.rel (%p831_p7) target bundleno = 32 (0x20), region = 28 }
  0x12   : > { %207 = sbr.rel (!%p111_p3) target bundleno = 32 (0x20), region = 32  ;;  %s209_s29 = sand.u32 (%p111_p3), 1, %s1050_s19  }
  0x13   : > { %s833_s30 = sshll.u32 (%p111_p3), %s1058_s21, 2  ;;  %s832_s6 = sshll.u32 (%p111_p3), %s209_s29, 6 }
  0x14   : > { %s1144_s9 = scalar_lea.vmem (%p111_p3), %s1243_s3, %s833_s30  ;;  %s211_s10 = scalar_lea.vmem (%p111_p3), [#allocation3], %s832_s6 }
  0x15   : > { %v229_v0 = vld [vmem:[%s1144_s9] sm:$0xf] (%p111_p3)  ;;  %v231_v1 = vld [vmem:[%s1144_s9 + $0xc] sm:$0xf] (%p111_p3)  ;;  %v233_v2 = vld [vmem:[%s1144_s9 + $0x18] sm:$0xf] (%p111_p3) }
  0x16   : > { %230 = vst [vmem:[%s211_s10] sm:$0xf] (%p111_p3), %v229_v0  ;;  %232 = vst [vmem:[%s211_s10 + $0x4] sm:$0xf] (%p111_p3), %v231_v1  ;;  %v235_v3 = vld [vmem:[%s1144_s9 + $0x24] sm:$0xf] (%p111_p3) }
  0x17   : > { %v237_v4 = vld [vmem:[%s1144_s9 + $0x30] sm:$0xf] (%p111_p3)  ;;  %234 = vst [vmem:[%s211_s10 + $0x8] sm:$0xf] (%p111_p3), %v233_v2  ;;  %236 = vst [vmem:[%s211_s10 + $0xc] sm:$0xf] (%p111_p3), %v235_v3 }
  0x18   : > { %238 = vst [vmem:[%s211_s10 + $0x10] sm:$0xf] (%p111_p3), %v237_v4  ;;  %v239_v5 = vld [vmem:[%s1144_s9 + $0x3c] sm:$0xf] (%p111_p3)  ;;  %v241_v6 = vld [vmem:[%s1144_s9 + $0x48] sm:$0xf] (%p111_p3) }
  0x19   : > { %v243_v7 = vld [vmem:[%s1144_s9 + $0x54] sm:$0xf]  ;;  %240 = vst [vmem:[%s211_s10 + $0x14] sm:$0xf] %v239_v5  ;;  %242 = vst [vmem:[%s211_s10 + $0x18] sm:$0xf] %v241_v6 }
  0x1a   : > { %244 = vst [vmem:[%s211_s10 + $0x1c] sm:$0xf] %v243_v7  ;;  %v245_v8 = vld [vmem:[%s1144_s9 + $0x60] sm:$0xf]  ;;  %v247_v9 = vld [vmem:[%s1144_s9 + $0x6c] sm:$0xf] }
  0x1b   : > { %v249_v10 = vld [vmem:[%s1144_s9 + $0x78] sm:$0xf]  ;;  %246 = vst [vmem:[%s211_s10 + $0x20] sm:$0xf] %v245_v8  ;;  %248 = vst [vmem:[%s211_s10 + $0x24] sm:$0xf] %v247_v9 }
  0x1c   : > { %250 = vst [vmem:[%s211_s10 + $0x28] sm:$0xf] %v249_v10  ;;  %v251_v11 = vld [vmem:[%s1144_s9 + $0x84] sm:$0xf]  ;;  %v253_v12 = vld [vmem:[%s1144_s9 + $0x90] sm:$0xf] }
  0x1d   : > { %v255_v13 = vld [vmem:[%s1144_s9 + $0x9c] sm:$0xf]  ;;  %252 = vst [vmem:[%s211_s10 + $0x2c] sm:$0xf] %v251_v11  ;;  %254 = vst [vmem:[%s211_s10 + $0x30] sm:$0xf] %v253_v12 }
  0x1e   : > { %256 = vst [vmem:[%s211_s10 + $0x34] sm:$0xf] %v255_v13  ;;  %v257_v14 = vld [vmem:[%s1144_s9 + $0xa8] sm:$0xf]  ;;  %v259_v15 = vld [vmem:[%s1144_s9 + $0xb4] sm:$0xf] }
  0x1f   : > { %258 = vst [vmem:[%s211_s10 + $0x38] sm:$0xf] %v257_v14  ;;  %260 = vst [vmem:[%s211_s10 + $0x3c] sm:$0xf] %v259_v15 }
  0x20 PF: > { %p834_p8 = scmp.ge.s32.totalorder %s1062_s22, 1  ;;  %p320_p9 = scmp.lt.s32.totalorder %s1062_s22, 4 }
  0x22   : > { %p321_p10 = pnand %p834_p8, %p320_p9 }
  0x23   : > { %s327_s11 = sand.u32 (!%p321_p10), 1, %s1046_s18   ;;  %p367_p11 = scmp.lt.s32.totalorder (!%p321_p10), %s1054_s20, 2 }
  0x24   : > { %324 = sbr.rel (%p321_p10) target bundleno = 636 (0x27c), region = 77  ;;  %s835_s12 = sshll.u32 (!%p321_p10), %s327_s11, 6 }
  0x25   : > { %s960_s13 = smul.u32 (!%p321_p10), 20, %s327_s11  ;;  %s1173_s24 = scalar_lea.vmem (!%p321_p10), [#allocation3], %s835_s12 }
  0x26   : > { %p836_p12 = scmp.ne.s32.totalorder (!%p321_p10), %s1054_s20, 0 }
  0x27   : > { %s1175_s25 = scalar_lea.vmem (!%p321_p10), [#allocation4], %s960_s13 }
  0x2b   : > { %s1167_s14 = scalar_select %p367_p11, %s1054_s20, 2 }
  0x2c   : > { %375 = sbr.rel (%p836_p12) target bundleno = 370 (0x172), region = 85  ;;  %v875_v16 = vld [vmem:[%s1240_s0] sm:$0xff] (!%p836_p12)   ;;  %v902_v17 = vld [vmem:[%s1240_s0 + $0x8] sm:$0xff] (!%p836_p12)   ;;  %v380_v18 = vld [vmem:[%s1240_s0 + $0x10] sm:$0x1] (!%p836_p12)  ;;  %vm394_vm0 = vcmask (!%p836_p12), 1041408  }
  0x2d   : > { %s369_s17 = scalar_lea.vmem %s1244_s4, %s1167_s14  ;;  %v877_v19 = vunpack.c.h.bf16 (!%p836_p12), %v875_v16  ;;  %v876_v20 = vunpack.c.l.bf16 (!%p836_p12), %v875_v16  ;;  %v385_v21 = vunpack.c.l.bf16 (!%p836_p12), %v380_v18  ;;  %v880_v22 = vunpack.c.l.bf16 (!%p836_p12), %v902_v17  ;;  %v837_v62 = vld [vmem:[%s1241_s1] ss:$0 sm:$0xff] (!%p836_p12) }
  0x2e   : > { %v881_v24 = vunpack.c.h.bf16 (!%p836_p12), %v902_v17  ;;  %v838_v1 = vld [vmem:[%s1242_s2] ss:$0 sm:$0xff] (!%p836_p12) }
  0x2f   : > { %388 = vadd.xlane.f32.xlu1 (!%p836_p12), %v877_v19  ;;  %386 = vadd.xlane.f32.xlu0 (!%p836_p12), %v876_v20  ;;  %v395_v23 = vsel (!%p836_p12), %vm394_vm0, %v385_v21, 0.0 }
  0x33   : > { %390 = vadd.xlane.f32.xlu1 %v880_v22  ;;  %396 = vadd.xlane.f32.xlu0 %v395_v23 }
  0x37   : > { %392 = vadd.xlane.f32.xlu0 %v881_v24 }
  0xbc   : > { %v389_v25 = vpop.xlane.xlu1 %388  ;;  %v387_v26 = vpop.xlane.xlu0 %386 }
  0xbd   : > { %v400_v27 = vmul.f32 0.0078125, %v389_v25  ;;  %v399_v28 = vmul.f32 0.0078125, %v387_v26 }
  0xbf   : > { %v405_v29 = vsub.f32 %v877_v19, %v400_v27  ;;  %v404_v30 = vsub.f32 %v876_v20, %v399_v28 }
  0xc0   : > { %v391_v31 = vpop.xlane.xlu1 %390  ;;  %v397_v32 = vpop.xlane.xlu0 %396 }
  0xc1   : > { %v401_v33 = vmul.f32 0.0078125, %v391_v31  ;;  %v403_v34 = vmul.f32 0.0078125, %v397_v32  ;;  %v410_v35 = vmul.f32 %v405_v29, %v405_v29  ;;  %v409_v36 = vmul.f32 %v404_v30, %v404_v30 }
  0xc3   : > { %v406_v37 = vsub.f32 %v880_v22, %v401_v33  ;;  %v408_v38 = vsub.f32 %v385_v21, %v403_v34  ;;  %416 = vadd.xlane.f32.xlu0 %v410_v35  ;;  %414 = vadd.xlane.f32.xlu1 %v409_v36 }
  0xc4   : > { %v393_v39 = vpop.xlane.xlu0 %392 }
  0xc5   : > { %v402_v40 = vmul.f32 0.0078125, %v393_v39  ;;  %v411_v41 = vmul.f32 %v406_v37, %v406_v37  ;;  %v413_v42 = vmul.f32 %v408_v38, %v408_v38 }
  0xc7   : > { %v407_v43 = vsub.f32 %v881_v24, %v402_v40  ;;  %418 = vadd.xlane.f32.xlu1 %v411_v41  ;;  %v422_v45 = vsel %vm394_vm0, %v413_v42, 0.0 }
  0xc9   : > { %v412_v44 = vmul.f32 %v407_v43, %v407_v43 }
  0xcb   : > { %423 = vadd.xlane.f32.xlu1 %v422_v45  ;;  %420 = vadd.xlane.f32.xlu0 %v412_v44 }
 0x150   : > { %v415_v46 = vpop.xlane.xlu1 %414  ;;  %v417_v47 = vpop.xlane.xlu0 %416 }
 0x151   : > { %v425_v48 = vmul.f32 0.0078125, %v415_v46  ;;  %v426_v49 = vmul.f32 0.0078125, %v417_v47 }
 0x153   : > { %v430_v50 = vadd.f32 1e-05, %v425_v48  ;;  %v431_v51 = vadd.f32 1e-05, %v426_v49 }
 0x154   : > { %v419_v52 = vpop.xlane.xlu1 %418 }
 0x155   : > { %1003 = vrsqrt.f32 %v430_v50  ;;  %v427_v53 = vmul.f32 0.0078125, %v419_v52 }
 0x156   : > { %1005 = vrsqrt.f32 %v431_v51 }
 0x157   : > { %v432_v54 = vadd.f32 1e-05, %v427_v53 }
 0x158   : > { %v424_v55 = vpop.xlane.xlu1 %423  ;;  %v421_v56 = vpop.xlane.xlu0 %420 }
 0x159   : > { %1007 = vrsqrt.f32 %v432_v54  ;;  %v429_v57 = vmul.f32 0.0078125, %v424_v55  ;;  %v428_v58 = vmul.f32 0.0078125, %v421_v56 }
 0x15b   : > { %v434_v59 = vadd.f32 1e-05, %v429_v57  ;;  %v433_v60 = vadd.f32 1e-05, %v428_v58 }
 0x15d   : > { %1009 = vrsqrt.f32 %v434_v59 }
 0x15e   : > { %1011 = vrsqrt.f32 %v433_v60 }
 0x15f   : > { %v1004_v61 = vpop.eup %1003 }
 0x160   : > { %v1006_v63 = vpop.eup %1005  ;;  %v440_v0 = vmul.f32 %v1004_v61, %v404_v30 }
 0x161   : > { %v441_v2 = vmul.f32 %v1006_v63, %v405_v29 }
 0x162   : > { %v452_v3 = vmul.f32 %v837_v62, %v440_v0 }
 0x163   : > { %v1008_v4 = vpop.eup %1007  ;;  %v453_v5 = vmul.f32 %v837_v62, %v441_v2 }
 0x164   : > { %v464_v6 = vadd.f32 %v838_v1, %v452_v3  ;;  %v442_v8 = vmul.f32 %v1008_v4, %v406_v37 }
 0x165   : > { %v465_v7 = vadd.f32 %v838_v1, %v453_v5 }
 0x166   : > { %v454_v13 = vmul.f32 %v837_v62, %v442_v8 }
 0x167   : > { %v1010_v9 = vpop.eup %1009  ;;  %v885_v10 = vpack.c.bf16 %v465_v7, %v464_v6 }
 0x168   : > { %v1012_v11 = vpop.eup %1011  ;;  %v444_v12 = vmul.f32 %v1010_v9, %v408_v38  ;;  %v466_v18 = vadd.f32 %v838_v1, %v454_v13 }
 0x169   : > { %886 = vst [vmem:[#allocation2] sm:$0xff] %v885_v10   ;;  %v443_v14 = vmul.f32 %v1012_v11, %v407_v43 }
 0x16a   : > { %v456_v15 = vmul.f32 %v837_v62, %v444_v12 }
 0x16b   : > { %v455_v16 = vmul.f32 %v837_v62, %v443_v14 }
 0x16c   : > { %v468_v17 = vadd.f32 %v838_v1, %v456_v15 }
 0x16d   : > { %v467_v19 = vadd.f32 %v838_v1, %v455_v16 }
 0x16e   : > { %v868_v20 = vpack.c.bf16 %v468_v17, %v468_v17 }
 0x16f   : > { %v890_v21 = vpack.c.bf16 %v467_v19, %v466_v18 }
 0x170   : > { %494 = vst [vmem:[#allocation2 + $0x10] sm:$0x1] %v868_v20 }
 0x171   : > { %903 = vst [vmem:[#allocation2 + $0x8] sm:$0xff] %v890_v21  }
 0x172 PF: > { %v1013_v22 = vld [vmem:[%s1173_s24] sm:$0xff]   ;;  %v1064_v23 = vmov 0.0   ;;  %v1014_v24 = vld [vmem:[%s1173_s24 + $0x8] sm:$0xff]   ;;  %vm1065_vm1 = vmmov 0   ;;  %v1015_v25 = vld [vmem:[%s1173_s24 + $0x10] sm:$0xff]   ;;  %s861_s14 = sshll.u32 (%p1131_p6), %s1054_s20, 2 }
 0x173   : > { %944 = vmatprep.subr.bf16.mxu1 %v1064_v23  ;;  %916 = vmatprep.subr.bf16.mxu0 %v1064_v23  ;;  %v1016_v26 = vld [vmem:[%s1173_s24 + $0x18] sm:$0xff]   ;;  %v1017_v27 = vld [vmem:[%s1173_s24 + $0x20] sm:$0xff]   ;;  %v1018_v28 = vld [vmem:[%s1173_s24 + $0x28] sm:$0xff]  }
 0x174   : > { %952 = vmatpush3.bf16.msra.mxu1 %v1013_v22  ;;  %917 = vmatpush3.bf16.msra.mxu0 %v1013_v22  ;;  %v1019_v29 = vld [vmem:[%s1173_s24 + $0x30] sm:$0xff]   ;;  %v1020_v30 = vld [vmem:[%s1173_s24 + $0x38] sm:$0xff]   ;;  %v844_v34 = vld [vmem:[%s369_s17] ss:$0 sm:$0xff]  ;;  %s680_s17 = scalar_lea.vmem (%p1131_p6), %s1245_s5, %s861_s14 }
 0x175   : > { %945 = vmatprep.subr.bf16.mxu1 %v1064_v23  ;;  %918 = vmatprep.subr.bf16.mxu0 %v1064_v23  ;;  %v1022_v32 = vld [vmem:[#allocation2] sm:$0xff]  }
 0x176   : > { %936 = vmatprep.mubr.msk.bf16.mxu1 %vm1065_vm1, %v1064_v23  ;;  %932 = vmatprep.mubr.msk.bf16.mxu0 %vm1065_vm1, %v1064_v23 }
 0x177   : > { %v1023_v33 = vld [vmem:[#allocation2 + $0x10] ss:$0 sps:$4 sm:$0x11]  }
 0x178   : > { %953 = vmatpush3.bf16.msra.mxu1 %v1014_v24  ;;  %919 = vmatpush3.bf16.msra.mxu0 %v1014_v24  ;;  %v1021_v31 = vld [vmem:[#allocation2 + $0x8] sm:$0xff]  }
 0x179   : > { %946 = vmatprep.subr.bf16.mxu1 %v1064_v23  ;;  %920 = vmatprep.subr.bf16.mxu0 %v1064_v23 }
 0x17c   : > { %954 = vmatpush3.bf16.msra.mxu1 %v1015_v25  ;;  %921 = vmatpush3.bf16.msra.mxu0 %v1015_v25 }
 0x17d   : > { %947 = vmatprep.subr.bf16.mxu1 %v1064_v23  ;;  %922 = vmatprep.subr.bf16.mxu0 %v1064_v23 }
 0x180   : > { %955 = vmatpush3.bf16.msra.mxu1 %v1016_v26  ;;  %923 = vmatpush3.bf16.msra.mxu0 %v1016_v26 }
 0x181   : > { %948 = vmatprep.subr.bf16.mxu1 %v1064_v23  ;;  %924 = vmatprep.subr.bf16.mxu0 %v1064_v23 }
 0x184   : > { %956 = vmatpush3.bf16.msra.mxu1 %v1017_v27  ;;  %925 = vmatpush3.bf16.msra.mxu0 %v1017_v27 }
 0x185   : > { %949 = vmatprep.subr.bf16.mxu1 %v1064_v23  ;;  %926 = vmatprep.subr.bf16.mxu0 %v1064_v23 }
 0x188   : > { %957 = vmatpush3.bf16.msra.mxu1 %v1018_v28  ;;  %927 = vmatpush3.bf16.msra.mxu0 %v1018_v28 }
 0x189   : > { %950 = vmatprep.subr.bf16.mxu1 %v1064_v23  ;;  %928 = vmatprep.subr.bf16.mxu0 %v1064_v23 }
 0x18c   : > { %958 = vmatpush3.bf16.msra.mxu1 %v1019_v29  ;;  %929 = vmatpush3.bf16.msra.mxu0 %v1019_v29 }
 0x18d   : > { %951 = vmatprep.subr.bf16.mxu1 %v1064_v23  ;;  %930 = vmatprep.subr.bf16.mxu0 %v1064_v23 }
 0x190   : > { %959 = vmatpush3.bf16.msra.mxu1 %v1020_v30  ;;  %931 = vmatpush3.bf16.msra.mxu0 %v1020_v30 }
 0x193   : > { %937 = vmatmul.mubr.bf16.vlgmr.msra.gmra.mrb[0].mxu1 %v1021_v31  ;;  %933 = vmatmul.mubr.bf16.vlgmr.msra.gmra.mrb[0].mxu0 %v1022_v32 }
 0x194   : > { %940 = vmatprep.mubr.msk.bf16.mxu1 %vm1065_vm1, %v1064_v23 }
 0x19b   : > { %941 = vmatmul.mubr.bf16.gmra.mrb[4].mxu1 %v1023_v33 }
 0x266   : > { %v629_v35 = vpop.f32.mrb[0].mxu1  ;;  %v621_v36 = vpop.f32.mrb[0].mxu0 }
 0x267   : > { %v938_v37 = vpop.f32.mrb[1].mxu1  ;;  %v622_v38 = vadd.f32 %v844_v34, %v621_v36  ;;  %v934_v39 = vpop.f32.mrb[1].mxu0  ;;  %v630_v42 = vadd.f32 %v844_v34, %v629_v35 }
 0x268   : > { %v632_v40 = vpop.f32.mrb[2].mxu1  ;;  %v624_v41 = vpop.f32.mrb[2].mxu0 }
 0x269   : > { %v633_v43 = vadd.f32 %v844_v34, %v632_v40  ;;  %v939_v44 = vpop.f32.mrb[3].mxu1  ;;  %v625_v45 = vadd.f32 %v844_v34, %v624_v41  ;;  %v935_v46 = vpop.f32.mrb[3].mxu0 }
 0x26b   : > { %v900_v47 = vpack.c.bf16 %v633_v43, %v630_v42  ;;  %v895_v48 = vpack.c.bf16 %v625_v45, %v622_v38 }
 0x26d   : > { %904 = vst [vmem:[%s1175_s25 + $0x8] sm:$0xff] %v900_v47   ;;  %896 = vst [vmem:[%s1175_s25] sm:$0xff] %v895_v48   ;;  %675 = sbr.rel (!%p1131_p6) target bundleno = 636 (0x27c), region = 89 }
 0x26e   : > { %v637_v49 = vpop.f32.mrb[4].mxu1 }
 0x26f   : > { %v638_v50 = vadd.f32 %v844_v34, %v637_v49  ;;  %v942_v51 = vpop.f32.mrb[5].mxu1 }
 0x270   : > { %v640_v52 = vpop.f32.mrb[6].mxu1 }
 0x271   : > { %v873_v53 = vpack.c.bf16 %v638_v50, %v638_v50  ;;  %v943_v54 = vpop.f32.mrb[7].mxu1 }
 0x273   : > { %668 = vst [vmem:[%s1175_s25 + $0x10] sm:$0x1] %v873_v53 }
 0x274   : > { %v696_v55 = vld [vmem:[%s1175_s25] sm:$0xf]  ;;  %v698_v56 = vld [vmem:[%s1175_s25 + $0x4] sm:$0xf]  ;;  %v700_v57 = vld [vmem:[%s1175_s25 + $0x8] sm:$0xf] }
 0x275   : > { %v702_v58 = vld [vmem:[%s1175_s25 + $0xc] sm:$0xf]  ;;  %697 = vst [vmem:[%s680_s17] sm:$0xf] %v696_v55  ;;  %699 = vst [vmem:[%s680_s17 + $0xc] sm:$0xf] %v698_v56 }
 0x276   : > { %701 = vst [vmem:[%s680_s17 + $0x18] sm:$0xf] %v700_v57  ;;  %703 = vst [vmem:[%s680_s17 + $0x24] sm:$0xf] %v702_v58 }
 0x27a   : > { %v704_v59 = vld [vmem:[%s1175_s25 + $0x10] sm:$0xf] }
 0x27b   : > { %705 = vst [vmem:[%s680_s17 + $0x30] sm:$0xf] %v704_v59 }
 0x27c PF: > { %s15_s22 = sadd.s32 1, %s1062_s22   ;;  %s1247_s18 = smov %s1050_s19 }
 0x27d   : > { %p12_p13 = scmp.ge.s32.totalorder %s15_s22, 5   ;;  %s1248_s19 = smov %s1136_s28 }
 0x27e   : > { %s1249_s20 = smov %s1058_s21  ;;  %s1250_s21 = smov %s1252_s23 }
 0x27f   :  { %14 = sbr.rel (!%p12_p13) target bundleno = 3 (0x3), region = 167 }

// kernel: vit_forward.14
= control target key start
LH: loop header
LB: loop body
LE: loop exit
PB: predicated region body
PF: predicated region fallthrough
CT: control target
= control target key end

     0   :  { %s1630_s12 = smov 0   ;;  %s1632_s13 = smov 0   ;;  %s1904_s0 = inlined_call_operand.vmem [shape: bf16[2,17,384], index: 0, kind: input, shape index: {}, may-alias: {0,1,2}]   ;;  %s1905_s1 = inlined_call_operand.vmem [shape: bf16[2,17,384], index: 1, kind: input, shape index: {}, may-alias: {0,1,2}]   ;;  %s1906_s2 = inlined_call_operand.vmem [shape: bf16[2,17,384], index: 2, kind: input, shape index: {}, may-alias: {0,1,2}]   ;;  %s1907_s3 = inlined_call_operand.vmem [shape: bf16[2,17,128], index: 3, kind: output, shape index: {}]  }
   0x1   :  { %s1634_s14 = smov 0   ;;  %s1636_s15 = smov 0  }
   0x2   :  { %s1638_s16 = smov 0  }
   0x3 LB: > { %s25_s17 = sadd.s32 1, %s1600_s15  ;;  %p41_p1 = scmp.ne.s32.totalorder %s1592_s13, %s1588_s12  ;;  %s1604_s16 = sphi %s1638_s16, %s13_s16   ;;  %s1600_s15 = sphi %s1636_s15, %s1912_s15   ;;  %s1596_s14 = sphi %s1634_s14, %s1911_s14   ;;  %s1592_s13 = sphi %s1632_s13, %s1910_s13   ;;  %s1588_s12 = sphi %s1630_s12, %s1909_s12  }
   0x4   : > { %p27_p0 = scmp.ge.s32.totalorder %s25_s17, 2  ;;  %p42_p2 = scmp.eq.s32.totalorder %s1604_s16, 0 }
   0x5   : > { %s34_s20 = sadd.s32 1, %s1592_s13  ;;  %p1296_p5 = scmp.ge.s32.totalorder %s1604_s16, 2 }
   0x6   : > { %s1914_s17 = smov (%p27_p0, %s25_s17), 0  ;;  %p1661_p3 = por %p42_p2, %p41_p1 }
   0x7   : > { %s29_s19 = ssub.s32 %s1600_s15, %s1914_s17  ;;  %155 = sbr.rel (%p1296_p5) target bundleno = 35 (0x23), region = 16 }
   0x8   : > { %p32_p4 = scmp.eq.s32.totalorder %s29_s19, 0 }
   0xa   : > { %s1669_s21 = scalar_select %p32_p4, %s1592_s13, %s34_s20  }
   0xe   : > { %158 = sbr.rel (!%p1661_p3) target bundleno = 21 (0x15), region = 20  ;;  %s160_s22 = sand.u32 (%p1661_p3), 1, %s1592_s13  }
   0xf   : > { %s1448_s23 = smul.u32 (%p1661_p3), 36, %s1600_s15 }
  0x10   : > { %s1447_s24 = smul.u32 (%p1661_p3), 12, %s160_s22 }
  0x11   : > { %s166_s27 = scalar_lea.vmem (%p1661_p3), %s1904_s0, %s1448_s23 }
  0x12   : > { %v182_v0 = vld [vmem:[%s166_s27] sm:$0xf] (%p1661_p3)  ;;  %v184_v1 = vld [vmem:[%s166_s27 + $0xc] sm:$0xf] (%p1661_p3)  ;;  %s162_s28 = scalar_lea.vmem (%p1661_p3), [#allocation2], %s1447_s24 }
  0x13   : > { %183 = vst [vmem:[%s162_s28] sm:$0xf] (%p1661_p3), %v182_v0  ;;  %185 = vst [vmem:[%s162_s28 + $0x4] sm:$0xf] (%p1661_p3), %v184_v1  ;;  %v186_v2 = vld [vmem:[%s166_s27 + $0x18] sm:$0xf] (%p1661_p3) }
  0x14   : > { %187 = vst [vmem:[%s162_s28 + $0x8] sm:$0xf] (%p1661_p3), %v186_v2 }
  0x15 PF: > { %216 = sbr.rel (!%p1661_p3) target bundleno = 28 (0x1c), region = 61  ;;  %s218_s29 = sand.u32 (%p1661_p3), 1, %s1592_s13  }
  0x16   : > { %s1298_s30 = smul.u32 (%p1661_p3), 36, %s1600_s15 }
  0x17   : > { %s1449_s4 = smul.u32 (%p1661_p3), 12, %s218_s29 }
  0x18   : > { %s1204_s7 = scalar_lea.vmem (%p1661_p3), %s1905_s1, %s1298_s30 }
  0x19   : > { %v1299_v3 = vld [vmem:[%s1204_s7 + $0x4] sm:$0xf] (%p1661_p3)  ;;  %v1300_v4 = vld [vmem:[%s1204_s7 + $0x10] sm:$0xf] (%p1661_p3)  ;;  %s220_s8 = scalar_lea.vmem (%p1661_p3), [#allocation3], %s1449_s4 }
  0x1a   : > { %242 = vst [vmem:[%s220_s8] sm:$0xf] (%p1661_p3), %v1299_v3  ;;  %244 = vst [vmem:[%s220_s8 + $0x4] sm:$0xf] (%p1661_p3), %v1300_v4  ;;  %v1301_v5 = vld [vmem:[%s1204_s7 + $0x1c] sm:$0xf] (%p1661_p3) }
  0x1b   : > { %246 = vst [vmem:[%s220_s8 + $0x8] sm:$0xf] (%p1661_p3), %v1301_v5 }
  0x1c PF: > { %275 = sbr.rel (!%p1661_p3) target bundleno = 35 (0x23), region = 102  ;;  %s277_s9 = sand.u32 (%p1661_p3), 1, %s1592_s13  }
  0x1d   : > { %s1302_s10 = smul.u32 (%p1661_p3), 36, %s1600_s15 }
  0x1e   : > { %s1450_s11 = smul.u32 (%p1661_p3), 12, %s277_s9 }
  0x1f   : > { %s1211_s22 = scalar_lea.vmem (%p1661_p3), %s1906_s2, %s1302_s10 }
  0x20   : > { %v1303_v6 = vld [vmem:[%s1211_s22 + $0x8] sm:$0xf] (%p1661_p3)  ;;  %v1304_v7 = vld [vmem:[%s1211_s22 + $0x14] sm:$0xf] (%p1661_p3)  ;;  %s279_s23 = scalar_lea.vmem (%p1661_p3), [#allocation4], %s1450_s11 }
  0x21   : > { %301 = vst [vmem:[%s279_s23] sm:$0xf] (%p1661_p3), %v1303_v6  ;;  %303 = vst [vmem:[%s279_s23 + $0x4] sm:$0xf] (%p1661_p3), %v1304_v7  ;;  %v1305_v8 = vld [vmem:[%s1211_s22 + $0x20] sm:$0xf] (%p1661_p3) }
  0x22   : > { %305 = vst [vmem:[%s279_s23 + $0x8] sm:$0xf] (%p1661_p3), %v1305_v8 }
  0x23 PF: > { %p1306_p6 = scmp.ge.s32.totalorder %s1604_s16, 1  ;;  %p333_p7 = scmp.lt.s32.totalorder %s1604_s16, 3 }
  0x25   : > { %p334_p8 = pnand %p1306_p6, %p333_p7 }
  0x26   : > { %s340_s18 = sand.u32 (!%p334_p8), 1, %s1588_s12   ;;  %vm424_vm0 = vcmask (!%p334_p8), 261120   ;;  %vm495_vm1 = vcmask (!%p334_p8), 131072   ;;  %vm488_vm2 = vcmask (!%p334_p8), 138240   ;;  %s1606_s12 = smov (!%p334_p8), 96   ;;  %vm537_vm3 = vcmask (!%p334_p8), 1040384  }
  0x27   : > { %337 = sbr.rel (%p334_p8) target bundleno = 1964 (0x7ac), region = 143  ;;  %v1607_v27 = vmov (!%p334_p8), 0   ;;  %s1608_s28 = smov (!%p334_p8), 64   ;;  %vm1137_vm4 = vcmask (!%p334_p8), 523264   ;;  %vm1161_vm5 = vsmask.f32 (!%p334_p8), 256 }
  0x28   : > { %s1696_s24 = smul.u32 (!%p334_p8), 12, %s340_s18  ;;  %v1735_v28 = vsel (!%p334_p8), %vm537_vm3, 65535, %v1607_v27  ;;  %s1609_s29 = smov (!%p334_p8), 32   ;;  %vm1141_vm6 = vcmask (!%p334_p8), 785408   ;;  %vm1162_vm7 = vmand (!%p334_p8), %vm537_vm3, %vm1161_vm5 }
  0x29   : > { %p390_p9 = scmp.lt.s32.totalorder (!%p334_p8), %s1596_s14, 1 }
  0x2a   : > { %s349_s25 = scalar_lea.vmem (!%p334_p8), [#allocation3], %s1696_s24  ;;  %s342_s26 = scalar_lea.vmem (!%p334_p8), [#allocation2], %s1696_s24 }
  0x2b   : > { %v1699_v9 = vld [vmem:[%s349_s25] sm:$0xff] (!%p334_p8)   ;;  %v1701_v10 = vld [vmem:[%s349_s25 + $0x8] ss:$0 sps:$4 sm:$0x11] (!%p334_p8)   ;;  %s356_s27 = scalar_lea.vmem (!%p334_p8), [#allocation4], %s1696_s24 }
  0x2c   : > { %v1704_v11 = vld [vmem:[%s342_s26] sm:$0xff] (!%p334_p8)   ;;  %1439 = vmatprep.subr.msk.bf16.mxu0 (!%p334_p8), %vm424_vm0, %v1699_v9  ;;  %v432_v12 = vsel (!%p334_p8), %vm424_vm0, %v1699_v9, 0  ;;  %v435_v13 = vsel (!%p334_p8), %vm424_vm0, %v1701_v10, 0  ;;  %v1716_v14 = vld [vmem:[%s342_s26 + $0x8] ss:$0 sps:$4 sm:$0x11] (!%p334_p8)  }
  0x2d   : > { %1376 = vmatpush3.bf16.xpose.msra.mxu0 (!%p334_p8), %v432_v12  ;;  %1379 = vmatprep.mubr.msk.bf16.mxu0 (!%p334_p8), %vm424_vm0, %v1704_v11  ;;  %v1728_v25 = vld [vmem:[%s356_s27] sm:$0xff] (!%p334_p8)   ;;  %v1731_v26 = vld [vmem:[%s356_s27 + $0x8] ss:$0 sps:$4 sm:$0x11] (!%p334_p8)  }
  0x2e   : > { %1440 = vmatprep.subr.msk.bf16.mxu0 %vm424_vm0, %v1701_v10  ;;  %1383 = vmatprep.subr.bf16.mxu1 %v1728_v25  ;;  %v541_v29 = vand.u32 %v1731_v26, %v1735_v28  ;;  %s1916_s14 = smov (!%p390_p9, %s1596_s14), 1 }
  0x2f   : > { %1384 = vmatpush3.bf16.msra.mxu1 %v1728_v25  ;;  %s1452_s30 = smul.u32 12, %s1916_s14 }
  0x30   : > { %1385 = vmatprep.subr.bf16.mxu1 %v541_v29 }
  0x31   : > { %s397_s6 = scalar_lea.vmem %s1907_s3, %s1452_s30 }
  0x33   : > { %1386 = vmatpush3.bf16.msra.mxu1 %v541_v29 }
  0x35   : > { %1378 = vmatpush3.bf16.xpose.msra.mxu0 %v435_v13 }
  0x3c   : > { %1380 = vmatmul.mubr.msk.bf16.vlgmr.msra.gmra.mrb[0].mxu0 %vm424_vm0, %v1716_v14 }
 0x10f   : > { %v1381_v15 = vpop.f32.mrb[0].mxu0 }
 0x110   : > { %v487_v16 = vmul.f32 0.17677669, %v1381_v15  ;;  %v471_v17 = vpop.f32.mrb[1].mxu0 }
 0x111   : > { %v485_v18 = vmul.f32 0.17677669, %v471_v17  ;;  %v1382_v19 = vpop.f32.mrb[2].mxu0 }
 0x112   : > { %v474_v20 = vpop.f32.mrb[3].mxu0  ;;  %v496_v21 = vsel %vm495_vm1, %v487_v16, -inf }
 0x113   : > { %v486_v22 = vmul.f32 0.17677669, %v474_v20  ;;  %497 = vmax.xlane.f32.xlu1 %v496_v21  ;;  %v489_v23 = vsel %vm488_vm2, %v485_v18, -inf }
 0x114   : > { %490 = vmax.xlane.f32.xlu0 %v489_v23 }
 0x115   : > { %v492_v24 = vsel %vm488_vm2, %v486_v22, -inf }
 0x118   : > { %493 = vmax.xlane.f32.xlu0 %v492_v24 }
 0x124   : > { %598 = vrot.lane.b32.xlu1 %v1699_v9, %s1606_s12 }
 0x128   : > { %594 = vrot.lane.b32.xlu1 %v1704_v11, %s1606_s12 }
 0x12c   : > { %596 = vrot.lane.b32.xlu1 %v1716_v14, %s1606_s12 }
 0x12e   : > { %600 = vrot.lane.b32.xlu0 %v1701_v10, %s1606_s12 }
 0x1a0   : > { %v498_v30 = vpop.xlane.xlu1 %497 }
 0x1a1   : > { %v501_v31 = vsub.f32 %v487_v16, %v498_v30  ;;  %v491_v32 = vpop.xlane.xlu0 %490 }
 0x1a2   : > { %v499_v33 = vsub.f32 %v485_v18, %v491_v32 }
 0x1a3   : > { %v506_v34 = vmul.f32 1.442695, %v501_v31 }
 0x1a4   : > { %v599_v35 = vpop.permute.xlu1 %598  ;;  %v502_v36 = vmul.f32 1.442695, %v499_v33 }
 0x1a5   : > { %v494_v37 = vpop.xlane.xlu0 %493  ;;  %1441 = vmatprep.subr.msk.bf16.mxu1 %vm424_vm0, %v599_v35  ;;  %1518 = vpow2.f32 %v506_v34  ;;  %v609_v44 = vsel %vm424_vm0, %v599_v35, 0 }
 0x1a6   : > { %v500_v38 = vsub.f32 %v486_v22, %v494_v37  ;;  %1520 = vpow2.f32 %v502_v36 }
 0x1a8   : > { %v504_v39 = vmul.f32 1.442695, %v500_v38  ;;  %v595_v46 = vpop.permute.xlu1 %594 }
 0x1a9   : > { %v601_v47 = vpop.permute.xlu0 %600 }
 0x1aa   : > { %1522 = vpow2.f32 %v504_v39  ;;  %v612_v48 = vsel %vm424_vm0, %v601_v47, 0 }
 0x1ac   : > { %v597_v49 = vpop.permute.xlu1 %596 }
 0x1af   : > { %v1744_v40 = vpop.eup %1518 }
 0x1b0   : > { %v1746_v41 = vpop.eup %1520  ;;  %v521_v45 = vpack.c.bf16 %v1744_v40, %v1744_v40 }
 0x1b4   : > { %v1748_v42 = vpop.eup %1522 }
 0x1b5   : > { %v520_v43 = vpack.c.bf16 %v1748_v42, %v1746_v41 }
 0x1b7   : > { %1387 = vmatprep.mubr.msk.bf16.mxu1 %vm488_vm2, %v520_v43 }
 0x1b8   : > { %1388 = vmatmul.mubr.msk.bf16.vlgmr.msra.gmra.mrb[0].mxu1 %vm488_vm2, %v521_v45 }
 0x1b9   : > { %1392 = vmatpush3.bf16.xpose.msra.mxu1 %v609_v44  ;;  %1395 = vmatprep.mubr.msk.bf16.mxu1 %vm424_vm0, %v595_v46 }
 0x1ba   : > { %1442 = vmatprep.subr.msk.bf16.mxu1 %vm424_vm0, %v601_v47 }
 0x1c1   : > { %1394 = vmatpush3.bf16.xpose.msra.mxu1 %v612_v48 }
 0x1c8   : > { %1396 = vmatmul.mubr.msk.bf16.vlgmr.msra.gmra.mrb[4].mxu1 %vm424_vm0, %v597_v49 }
 0x28b   : > { %v1761_v50 = vpop.f32.mrb[0].mxu1 }
 0x28c   : > { %v1763_v51 = vpop.f32.mrb[1].mxu1 }
 0x28d   : > { %v1390_v52 = vpop.f32.mrb[2].mxu1 }
 0x28e   : > { %v1765_v53 = vpop.f32.mrb[3].mxu1 }
 0x29b   : > { %v1397_v54 = vpop.f32.mrb[4].mxu1 }
 0x29c   : > { %v664_v55 = vmul.f32 0.17677669, %v1397_v54  ;;  %v648_v56 = vpop.f32.mrb[5].mxu1 }
 0x29d   : > { %v662_v57 = vmul.f32 0.17677669, %v648_v56  ;;  %v1398_v58 = vpop.f32.mrb[6].mxu1 }
 0x29e   : > { %v651_v59 = vpop.f32.mrb[7].mxu1  ;;  %v671_v60 = vsel %vm495_vm1, %v664_v55, -inf }
 0x29f   : > { %v663_v61 = vmul.f32 0.17677669, %v651_v59  ;;  %672 = vmax.xlane.f32.xlu0 %v671_v60  ;;  %v665_v62 = vsel %vm488_vm2, %v662_v57, -inf }
 0x2a0   : > { %666 = vmax.xlane.f32.xlu1 %v665_v62 }
 0x2a1   : > { %v668_v63 = vsel %vm488_vm2, %v663_v61, -inf }
 0x2a3   : > { %669 = vmax.xlane.f32.xlu0 %v668_v63 }
 0x2b1   : > { %699 = vrot.lane.b32.xlu1 %v1731_v26, %s1606_s12 }
 0x2b5   : > { %766 = vrot.lane.b32.xlu1 %v1699_v9, %s1608_s28 }
 0x2b9   : > { %697 = vrot.lane.b32.xlu0 %v1728_v25, %s1606_s12  ;;  %768 = vrot.lane.b32.xlu1 %v1701_v10, %s1608_s28 }
 0x2bd   : > { %762 = vrot.lane.b32.xlu0 %v1704_v11, %s1608_s28  ;;  %764 = vrot.lane.b32.xlu1 %v1716_v14, %s1608_s28 }
 0x2c1   : > { %867 = vrot.lane.b32.xlu1 %v1731_v26, %s1608_s28 }
 0x32c   : > { %v673_v0 = vpop.xlane.xlu0 %672 }
 0x32d   : > { %v676_v1 = vsub.f32 %v664_v55, %v673_v0  ;;  %v667_v2 = vpop.xlane.xlu1 %666 }
 0x32e   : > { %v674_v3 = vsub.f32 %v662_v57, %v667_v2 }
 0x32f   : > { %v681_v4 = vmul.f32 1.442695, %v676_v1 }
 0x330   : > { %v677_v5 = vmul.f32 1.442695, %v674_v3  ;;  %v670_v6 = vpop.xlane.xlu0 %669 }
 0x331   : > { %v675_v7 = vsub.f32 %v663_v61, %v670_v6  ;;  %v700_v8 = vpop.permute.xlu1 %699  ;;  %1524 = vpow2.f32 %v681_v4 }
 0x332   : > { %v709_v13 = vand.u32 %v700_v8, %v1735_v28  ;;  %1526 = vpow2.f32 %v677_v5 }
 0x333   : > { %v679_v12 = vmul.f32 1.442695, %v675_v7 }
 0x334   : > { %v698_v15 = vpop.permute.xlu0 %697 }
 0x335   : > { %1528 = vpow2.f32 %v679_v12  ;;  %1399 = vmatprep.subr.bf16.mxu0 %v698_v15  ;;  %v767_v16 = vpop.permute.xlu1 %766 }
 0x336   : > { %1400 = vmatpush3.bf16.msra.mxu0 %v698_v15  ;;  %v777_v21 = vsel %vm424_vm0, %v767_v16, 0 }
 0x337   : > { %1401 = vmatprep.subr.bf16.mxu0 %v709_v13 }
 0x338   : > { %v763_v23 = vpop.permute.xlu0 %762 }
 0x339   : > { %v769_v24 = vpop.permute.xlu1 %768 }
 0x33a   : > { %1402 = vmatpush3.bf16.msra.mxu0 %v709_v13  ;;  %v780_v27 = vsel %vm424_vm0, %v769_v24, 0 }
 0x33b   : > { %1443 = vmatprep.subr.msk.bf16.mxu0 %vm424_vm0, %v767_v16  ;;  %v1786_v17 = vpop.eup %1524 }
 0x33c   : > { %v1788_v18 = vpop.eup %1526  ;;  %v696_v22 = vpack.c.bf16 %v1786_v17, %v1786_v17 }
 0x33d   : > { %v765_v29 = vpop.permute.xlu1 %764 }
 0x33f   : > { %v1790_v19 = vpop.eup %1528 }
 0x340   : > { %v695_v20 = vpack.c.bf16 %v1790_v19, %v1788_v18 }
 0x341   : > { %v868_v47 = vpop.permute.xlu1 %867 }
 0x342   : > { %1403 = vmatprep.mubr.msk.bf16.mxu0 %vm488_vm2, %v695_v20  ;;  %v877_v59 = vand.u32 %v868_v47, %v1735_v28 }
 0x343   : > { %1404 = vmatmul.mubr.msk.bf16.vlgmr.msra.gmra.mrb[4].mxu0 %vm488_vm2, %v696_v22 }
 0x344   : > { %1408 = vmatpush3.bf16.xpose.msra.mxu0 %v777_v21  ;;  %1411 = vmatprep.mubr.msk.bf16.mxu0 %vm424_vm0, %v763_v23 }
 0x345   : > { %1444 = vmatprep.subr.msk.bf16.mxu0 %vm424_vm0, %v769_v24 }
 0x34c   : > { %1410 = vmatpush3.bf16.xpose.msra.mxu0 %v780_v27 }
 0x353   : > { %1412 = vmatmul.mubr.msk.bf16.vlgmr.msra.gmra.mrb[8].mxu0 %vm424_vm0, %v765_v29  ;;  %v689_v29 = vsel %vm495_vm1, %v1786_v17, 0.0 }
 0x416   : > { %v1803_v30 = vpop.f32.mrb[4].mxu0 }
 0x417   : > { %v1805_v31 = vpop.f32.mrb[5].mxu0 }
 0x418   : > { %v1406_v32 = vpop.f32.mrb[6].mxu0 }
 0x419   : > { %v1807_v33 = vpop.f32.mrb[7].mxu0  ;;  %v683_v32 = vsel %vm488_vm2, %v1788_v18, 0.0 }
 0x426   : > { %v1413_v34 = vpop.f32.mrb[8].mxu0 }
 0x427   : > { %v832_v35 = vmul.f32 0.17677669, %v1413_v34  ;;  %v816_v36 = vpop.f32.mrb[9].mxu0 }
 0x428   : > { %v1414_v37 = vpop.f32.mrb[10].mxu0  ;;  %v830_v38 = vmul.f32 0.17677669, %v816_v36 }
 0x429   : > { %v819_v39 = vpop.f32.mrb[11].mxu0  ;;  %v839_v43 = vsel %vm495_vm1, %v832_v35, -inf }
 0x42a   : > { %v831_v44 = vmul.f32 0.17677669, %v819_v39  ;;  %840 = vmax.xlane.f32.xlu0 %v839_v43  ;;  %v833_v46 = vsel %vm488_vm2, %v830_v38, -inf }
 0x42c   : > { %v836_v45 = vsel %vm488_vm2, %v831_v44, -inf }
 0x42d   : > { %837 = vmax.xlane.f32.xlu1 %v836_v45 }
 0x42e   : > { %834 = vmax.xlane.f32.xlu0 %v833_v46 }
 0x43e   : > { %934 = vrot.lane.b32.xlu1 %v1699_v9, %s1609_s29 }
 0x442   : > { %930 = vrot.lane.b32.xlu1 %v1704_v11, %s1609_s29 }
 0x444   : > { %865 = vrot.lane.b32.xlu0 %v1728_v25, %s1608_s28 }
 0x448   : > { %936 = vrot.lane.b32.xlu0 %v1701_v10, %s1609_s29 }
 0x44c   : > { %932 = vrot.lane.b32.xlu0 %v1716_v14, %s1609_s29 }
 0x4b7   : > { %v841_v48 = vpop.xlane.xlu0 %840 }
 0x4b8   : > { %v844_v49 = vsub.f32 %v832_v35, %v841_v48  ;;  %v686_v35 = vsel %vm488_vm2, %v1790_v19, 0.0 }
 0x4ba   : > { %v849_v52 = vmul.f32 1.442695, %v844_v49  ;;  %v838_v54 = vpop.xlane.xlu1 %837 }
 0x4bb   : > { %v843_v55 = vsub.f32 %v831_v44, %v838_v54  ;;  %v835_v56 = vpop.xlane.xlu0 %834 }
 0x4bc   : > { %v842_v9 = vsub.f32 %v830_v38, %v835_v56  ;;  %1530 = vpow2.f32 %v849_v52 }
 0x4bd   : > { %v847_v57 = vmul.f32 1.442695, %v843_v55 }
 0x4be   : > { %v845_v11 = vmul.f32 1.442695, %v842_v9  ;;  %v935_v10 = vpop.permute.xlu1 %934 }
 0x4bf   : > { %1532 = vpow2.f32 %v847_v57  ;;  %v866_v58 = vpop.permute.xlu0 %865  ;;  %v945_v63 = vsel %vm424_vm0, %v935_v10, 0 }
 0x4c0   : > { %1534 = vpow2.f32 %v845_v11  ;;  %1415 = vmatprep.subr.bf16.mxu1 %v866_v58  ;;  %v508_v11 = vsel %vm488_vm2, %v1746_v41, 0.0 }
 0x4c1   : > { %1416 = vmatpush3.bf16.msra.mxu1 %v866_v58  ;;  %v511_v58 = vsel %vm488_vm2, %v1748_v42, 0.0 }
 0x4c2   : > { %1417 = vmatprep.subr.bf16.mxu1 %v877_v59  ;;  %v931_v1 = vpop.permute.xlu1 %930 }
 0x4c3   : > { %v937_v2 = vpop.permute.xlu0 %936 }
 0x4c4   : > { %v948_v3 = vsel %vm424_vm0, %v937_v2, 0 }
 0x4c5   : > { %1418 = vmatpush3.bf16.msra.mxu1 %v877_v59 }
 0x4c6   : > { %1445 = vmatprep.subr.msk.bf16.mxu1 %vm424_vm0, %v935_v10  ;;  %v1531_v14 = vpop.eup %1530 }
 0x4c7   : > { %v864_v0 = vpack.c.bf16 %v1531_v14, %v1531_v14  ;;  %v933_v4 = vpop.permute.xlu0 %932  ;;  %v857_v34 = vsel %vm495_vm1, %v1531_v14, 0.0 }
 0x4c9   : > { %v1533_v60 = vpop.eup %1532 }
 0x4ca   : > { %v1535_v61 = vpop.eup %1534 }
 0x4cb   : > { %v863_v62 = vpack.c.bf16 %v1533_v60, %v1535_v61 }
 0x4cd   : > { %1419 = vmatprep.mubr.msk.bf16.mxu1 %vm488_vm2, %v863_v62 }
 0x4ce   : > { %1420 = vmatmul.mubr.msk.bf16.vlgmr.msra.gmra.mrb[8].mxu1 %vm488_vm2, %v864_v0 }
 0x4cf   : > { %1424 = vmatpush3.bf16.xpose.msra.mxu1 %v945_v63  ;;  %1427 = vmatprep.mubr.msk.bf16.mxu1 %vm424_vm0, %v931_v1 }
 0x4d0   : > { %1446 = vmatprep.subr.msk.bf16.mxu1 %vm424_vm0, %v937_v2 }
 0x4d7   : > { %1426 = vmatpush3.bf16.xpose.msra.mxu1 %v948_v3 }
 0x4de   : > { %1428 = vmatmul.mubr.msk.bf16.vlgmr.msra.gmra.mrb[12].mxu1 %vm424_vm0, %v933_v4 }
 0x5a1   : > { %v1831_v5 = vpop.f32.mrb[8].mxu1 }
 0x5a2   : > { %v1833_v6 = vpop.f32.mrb[9].mxu1 }
 0x5a3   : > { %v1422_v7 = vpop.f32.mrb[10].mxu1 }
 0x5a4   : > { %v1835_v8 = vpop.f32.mrb[11].mxu1 }
 0x5b1   : > { %v1429_v12 = vpop.f32.mrb[12].mxu1 }
 0x5b2   : > { %v1000_v13 = vmul.f32 0.17677669, %v1429_v12  ;;  %v984_v15 = vpop.f32.mrb[13].mxu1 }
 0x5b3   : > { %v998_v16 = vmul.f32 0.17677669, %v984_v15  ;;  %v1430_v20 = vpop.f32.mrb[14].mxu1 }
 0x5b4   : > { %v987_v21 = vpop.f32.mrb[15].mxu1  ;;  %v1007_v22 = vsel %vm495_vm1, %v1000_v13, -inf }
 0x5b5   : > { %v999_v23 = vmul.f32 0.17677669, %v987_v21  ;;  %1008 = vmax.xlane.f32.xlu0 %v1007_v22  ;;  %v1001_v24 = vsel %vm488_vm2, %v998_v16, -inf }
 0x5b6   : > { %1002 = vmax.xlane.f32.xlu1 %v1001_v24 }
 0x5b7   : > { %v1004_v27 = vsel %vm488_vm2, %v999_v23, -inf }
 0x5b9   : > { %1005 = vmax.xlane.f32.xlu0 %v1004_v27 }
 0x5c7   : > { %1035 = vrot.lane.b32.xlu1 %v1731_v26, %s1609_s29  ;;  %v854_v26 = vsel %vm488_vm2, %v1533_v60, 0.0 }
 0x5cf   : > { %1033 = vrot.lane.b32.xlu0 %v1728_v25, %s1609_s29  ;;  %v851_v25 = vsel %vm488_vm2, %v1535_v61, 0.0 }
 0x5eb   : > { %690 = vadd.xlane.f32.xlu1 %v689_v29 }
 0x5ee   : > { %684 = vadd.xlane.f32.xlu0 %v683_v32 }
 0x5ef   : > { %858 = vadd.xlane.f32.xlu1 %v857_v34 }
 0x5f2   : > { %687 = vadd.xlane.f32.xlu0 %v686_v35 }
 0x5f3   : > { %855 = vadd.xlane.f32.xlu1 %v854_v26 }
 0x5f6   : > { %852 = vadd.xlane.f32.xlu0 %v851_v25 }
 0x642   : > { %v1009_v36 = vpop.xlane.xlu0 %1008 }
 0x643   : > { %v1012_v17 = vsub.f32 %v1000_v13, %v1009_v36  ;;  %v1003_v37 = vpop.xlane.xlu1 %1002 }
 0x644   : > { %v1010_v38 = vsub.f32 %v998_v16, %v1003_v37 }
 0x645   : > { %v1017_v39 = vmul.f32 1.442695, %v1012_v17 }
 0x646   : > { %v1013_v18 = vmul.f32 1.442695, %v1010_v38  ;;  %v1006_v43 = vpop.xlane.xlu0 %1005 }
 0x647   : > { %1536 = vpow2.f32 %v1017_v39  ;;  %v1011_v44 = vsub.f32 %v999_v23, %v1006_v43  ;;  %v1036_v45 = vpop.permute.xlu1 %1035 }
 0x648   : > { %1538 = vpow2.f32 %v1013_v18  ;;  %v1045_v19 = vand.u32 %v1036_v45, %v1735_v28  ;;  %v514_v28 = vsel %vm495_vm1, %v1744_v40, 0.0 }
 0x649   : > { %v1015_v46 = vmul.f32 1.442695, %v1011_v44 }
 0x64a   : > { %v1034_v47 = vpop.permute.xlu0 %1033 }
 0x64b   : > { %1540 = vpow2.f32 %v1015_v46  ;;  %1431 = vmatprep.subr.bf16.mxu0 %v1034_v47 }
 0x64c   : > { %1432 = vmatpush3.bf16.msra.mxu0 %v1034_v47 }
 0x64d   : > { %1433 = vmatprep.subr.bf16.mxu0 %v1045_v19 }
 0x650   : > { %1434 = vmatpush3.bf16.msra.mxu0 %v1045_v19 }
 0x651   : > { %v1537_v48 = vpop.eup %1536 }
 0x652   : > { %v1539_v49 = vpop.eup %1538  ;;  %v1025_v52 = vsel %vm495_vm1, %v1537_v48, 0.0  ;;  %v1032_v57 = vpack.c.bf16 %v1537_v48, %v1537_v48 }
 0x653   : > { %1026 = vadd.xlane.f32.xlu0 %v1025_v52  ;;  %v1019_v54 = vsel %vm488_vm2, %v1539_v49, 0.0 }
 0x654   : > { %1020 = vadd.xlane.f32.xlu1 %v1019_v54 }
 0x655   : > { %v1541_v55 = vpop.eup %1540 }
 0x656   : > { %v1022_v56 = vsel %vm488_vm2, %v1541_v55, 0.0  ;;  %v1031_v9 = vpack.c.bf16 %v1541_v55, %v1539_v49 }
 0x657   : > { %1023 = vadd.xlane.f32.xlu0 %v1022_v56 }
 0x658   : > { %515 = vadd.xlane.f32.xlu1 %v514_v28  ;;  %1435 = vmatprep.mubr.msk.bf16.mxu0 %vm488_vm2, %v1031_v9 }
 0x659   : > { %1436 = vmatmul.mubr.msk.bf16.vlgmr.msra.gmra.mrb[12].mxu0 %vm488_vm2, %v1032_v57 }
 0x65b   : > { %509 = vadd.xlane.f32.xlu0 %v508_v11  ;;  %v1163_v11 = vld [vmem:[%s397_s6 + $0x8] sm:$0x1] }
 0x65c   : > { %512 = vadd.xlane.f32.xlu1 %v511_v58 }
 0x678   : > { %v691_v59 = vpop.xlane.xlu1 %690 }
 0x679   : > { %1542 = vrcp.f32 %v691_v59 }
 0x67b   : > { %v685_v10 = vpop.xlane.xlu0 %684 }
 0x67c   : > { %1544 = vrcp.f32 %v685_v10  ;;  %v859_v14 = vpop.xlane.xlu1 %858 }
 0x67f   : > { %v688_v40 = vpop.xlane.xlu0 %687 }
 0x680   : > { %1546 = vrcp.f32 %v688_v40  ;;  %v856_v62 = vpop.xlane.xlu1 %855 }
 0x681   : > { %1548 = vrcp.f32 %v859_v14 }
 0x683   : > { %v853_v60 = vpop.xlane.xlu0 %852  ;;  %v1543_v61 = vpop.eup %1542 }
 0x684   : > { %1550 = vrcp.f32 %v853_v60  ;;  %v761_v0 = vmul.f32 %v1543_v61, %v1803_v30 }
 0x685   : > { %1552 = vrcp.f32 %v856_v62 }
 0x686   : > { %v1545_v63 = vpop.eup %1544 }
 0x687   : > { %v759_v41 = vmul.f32 %v1545_v63, %v1805_v31 }
 0x689   : > { %v1497_v42 = vpack.i.bf16 %v759_v41, %v761_v0 }
 0x68a   : > { %v1547_v1 = vpop.eup %1546 }
 0x68b   : > { %1498 = vrot.lane.b32.xlu0 %v1497_v42, %s1609_s29  ;;  %v760_v2 = vmul.f32 %v1547_v1, %v1807_v33  ;;  %v1549_v3 = vpop.eup %1548 }
 0x68c   : > { %v929_v12 = vmul.f32 %v1549_v3, %v1831_v5 }
 0x68d   : > { %1103 = vrot.lane.b32.xlu1 %v760_v2, %s1609_s29 }
 0x68e   : > { %v1551_v4 = vpop.eup %1550 }
 0x68f   : > { %v927_v7 = vmul.f32 %v1551_v4, %v1833_v6  ;;  %v1553_v15 = vpop.eup %1552 }
 0x690   : > { %v928_v30 = vmul.f32 %v1553_v15, %v1835_v8 }
 0x691   : > { %v1502_v13 = vpack.i.bf16 %v927_v7, %v929_v12 }
 0x693   : > { %1503 = vrot.lane.b32.xlu1 %v1502_v13, %s1608_s28 }
 0x697   : > { %1115 = vrot.lane.b32.xlu1 %v928_v30, %s1608_s28 }
 0x6e0   : > { %v1027_v31 = vpop.xlane.xlu0 %1026 }
 0x6e1   : > { %v1021_v16 = vpop.xlane.xlu1 %1020  ;;  %1554 = vrcp.f32 %v1027_v31 }
 0x6e2   : > { %1556 = vrcp.f32 %v1021_v16 }
 0x6e4   : > { %v1024_v33 = vpop.xlane.xlu0 %1023 }
 0x6e5   : > { %1558 = vrcp.f32 %v1024_v33  ;;  %v516_v34 = vpop.xlane.xlu1 %515 }
 0x6e6   : > { %1560 = vrcp.f32 %v516_v34 }
 0x6e8   : > { %v510_v35 = vpop.xlane.xlu0 %509 }
 0x6e9   : > { %v513_v26 = vpop.xlane.xlu1 %512  ;;  %1562 = vrcp.f32 %v510_v35 }
 0x6ea   : > { %1564 = vrcp.f32 %v513_v26 }
 0x6eb   : > { %v1555_v20 = vpop.eup %1554 }
 0x6ec   : > { %v1557_v22 = vpop.eup %1556 }
 0x6ef   : > { %v1559_v27 = vpop.eup %1558 }
 0x6f0   : > { %v1561_v37 = vpop.eup %1560 }
 0x6f1   : > { %v593_v47 = vmul.f32 %v1561_v37, %v1761_v50 }
 0x6f3   : > { %v1563_v38 = vpop.eup %1562 }
 0x6f4   : > { %v1565_v39 = vpop.eup %1564  ;;  %v591_v45 = vmul.f32 %v1563_v38, %v1763_v51 }
 0x6f5   : > { %v592_v48 = vmul.f32 %v1565_v39, %v1765_v53 }
 0x6fd   : > { %v1499_v17 = vpop.permute.xlu0 %1498 }
 0x6fe   : > { %v1501_v18 = vunpack.i.h.bf16 %v1499_v17  ;;  %v1500_v44 = vunpack.i.l.bf16 %v1499_v17 }
 0x6ff   : > { %v1104_v25 = vpop.permute.xlu1 %1103 }
 0x700   : > { %v1134_v49 = vsel %vm424_vm0, %v591_v45, %v1501_v18  ;;  %v1136_v55 = vsel %vm424_vm0, %v593_v47, %v1500_v44  ;;  %v1135_v51 = vsel %vm424_vm0, %v592_v48, %v1104_v25 }
 0x705   : > { %v1504_v36 = vpop.permute.xlu1 %1503 }
 0x706   : > { %v1506_v46 = vunpack.i.h.bf16 %v1504_v36  ;;  %v1505_v19 = vunpack.i.l.bf16 %v1504_v36 }
 0x708   : > { %v1138_v50 = vsel %vm1137_vm4, %v1134_v49, %v1506_v46  ;;  %v1140_v53 = vsel %vm1137_vm4, %v1136_v55, %v1505_v19 }
 0x709   : > { %v1116_v43 = vpop.permute.xlu1 %1115 }
 0x70a   : > { %v1139_v28 = vsel %vm1137_vm4, %v1135_v51, %v1116_v43 }
 0x72c   : > { %v1437_v21 = vpop.f32.mrb[12].mxu0 }
 0x72d   : > { %v1097_v6 = vmul.f32 %v1555_v20, %v1437_v21  ;;  %v1081_v23 = vpop.f32.mrb[13].mxu0 }
 0x72e   : > { %v1095_v5 = vmul.f32 %v1557_v22, %v1081_v23  ;;  %v1438_v24 = vpop.f32.mrb[14].mxu0 }
 0x72f   : > { %v1084_v29 = vpop.f32.mrb[15].mxu0 }
 0x730   : > { %v1507_v8 = vpack.i.bf16 %v1095_v5, %v1097_v6  ;;  %v1096_v32 = vmul.f32 %v1559_v27, %v1084_v29 }
 0x732   : > { %1508 = vrot.lane.b32.xlu0 %v1507_v8, %s1606_s12  ;;  %1127 = vrot.lane.b32.xlu1 %v1096_v32, %s1606_s12 }
 0x7a4   : > { %v1128_v52 = vpop.permute.xlu1 %1127  ;;  %v1509_v54 = vpop.permute.xlu0 %1508 }
 0x7a5   : > { %v1511_v56 = vunpack.i.h.bf16 %v1509_v54  ;;  %v1510_v9 = vunpack.i.l.bf16 %v1509_v54  ;;  %v1143_v57 = vsel %vm1141_vm6, %v1139_v28, %v1128_v52 }
 0x7a7   : > { %v1142_v58 = vsel %vm1141_vm6, %v1138_v50, %v1511_v56  ;;  %v1144_v59 = vsel %vm1141_vm6, %v1140_v53, %v1510_v9 }
 0x7a8   : > { %v1337_v10 = vpack.c.bf16 %v1144_v59, %v1144_v59  ;;  %v1341_v14 = vpack.c.bf16 %v1143_v57, %v1142_v58 }
 0x7aa   : > { %1342 = vst [vmem:[%s397_s6] sm:$0xff] %v1341_v14   ;;  %v1164_v40 = vsel %vm1162_vm7, %v1337_v10, %v1163_v11 }
 0x7ab   : > { %1165 = vst [vmem:[%s397_s6 + $0x8] sm:$0x1] %v1164_v40 }
 0x7ac PF: > { %s13_s16 = sadd.s32 1, %s1604_s16   ;;  %s1909_s12 = smov %s1592_s13 }
 0x7ad   : > { %p10_p10 = scmp.ge.s32.totalorder %s13_s16, 4   ;;  %s1910_s13 = smov %s1669_s21 }
 0x7ae   : > { %s1911_s14 = smov %s1600_s15  ;;  %s1912_s15 = smov %s1914_s17 }
 0x7af   :  { %12 = sbr.rel (!%p10_p10) target bundleno = 3 (0x3), region = 206 }

// kernel: vit_forward.17
= control target key start
LH: loop header
LB: loop body
LE: loop exit
PB: predicated region body
PF: predicated region fallthrough
CT: control target
= control target key end

     0   :  { %v451_v23 = vmov 0.0   ;;  %s561_s1 = inlined_call_operand.vmem [shape: bf16[256,128], index: 1, kind: input, shape index: {}]   ;;  %s562_s0 = inlined_call_operand.vmem [shape: bf16[34,256], index: 0, kind: input, shape index: {}]   ;;  %s563_s3 = inlined_call_operand.vmem [shape: bf16[34,128], index: 3, kind: input, shape index: {}]   ;;  %s564_s2 = inlined_call_operand.vmem [shape: f32[1,128], index: 2, kind: input, shape index: {}]   ;;  %s565_s4 = inlined_call_operand.vmem [shape: bf16[34,128], index: 4, kind: output, shape index: {}]  }
   0x1   :  { %v427_v0 = vld [vmem:[%s561_s1 + $0x40] sm:$0xff]   ;;  %v429_v2 = vld [vmem:[%s561_s1 + $0x48] sm:$0xff]   ;;  %v431_v4 = vld [vmem:[%s561_s1 + $0x50] sm:$0xff]   ;;  %26 = vst [vmem:[#allocation2 + $0x20] sm:$0x3] %v451_v23 }
   0x2   :  { %v428_v1 = vld [vmem:[%s561_s1] sm:$0xff]   ;;  %410 = vmatprep.subr.bf16.mxu1 %v427_v0  ;;  %376 = vmatprep.subr.bf16.mxu0 %v427_v0  ;;  %v430_v3 = vld [vmem:[%s561_s1 + $0x8] sm:$0xff]   ;;  %v432_v5 = vld [vmem:[%s561_s1 + $0x10] sm:$0xff]  }
   0x3   :  { %418 = vmatpush3.bf16.msra.mxu1 %v428_v1  ;;  %377 = vmatpush3.bf16.msra.mxu0 %v428_v1  ;;  %v433_v6 = vld [vmem:[%s561_s1 + $0x58] sm:$0xff]   ;;  %v435_v8 = vld [vmem:[%s561_s1 + $0x60] sm:$0xff]   ;;  %v437_v10 = vld [vmem:[%s561_s1 + $0x68] sm:$0xff]  }
   0x4   :  { %411 = vmatprep.subr.bf16.mxu1 %v429_v2  ;;  %378 = vmatprep.subr.bf16.mxu0 %v429_v2  ;;  %v434_v7 = vld [vmem:[%s561_s1 + $0x18] sm:$0xff]   ;;  %v436_v9 = vld [vmem:[%s561_s1 + $0x20] sm:$0xff]   ;;  %v438_v13 = vld [vmem:[%s561_s1 + $0x28] sm:$0xff]  }
   0x5   :  { %v445_v11 = vld [vmem:[%s562_s0 + $0x14] ss:$8 sps:$4 sm:$0xff]   ;;  %v448_v12 = vld [vmem:[%s562_s0 + $0x4] ss:$8 sps:$4 sm:$0xff]   ;;  %v443_v19 = vld [vmem:[%s562_s0 + $0x10] ss:$8 sps:$4 sm:$0xff]  }
   0x6   :  { %v439_v14 = vld [vmem:[%s561_s1 + $0x70] sm:$0xff]   ;;  %232 = vmatprep.mubr.bf16.mxu1 %v445_v11  ;;  %224 = vmatprep.mubr.bf16.mxu0 %v448_v12  ;;  %v441_v16 = vld [vmem:[%s561_s1 + $0x78] sm:$0xff]   ;;  %v36_v18 = vld [vmem:[%s562_s0 + $0x20] sm:$0x11] }
   0x7   :  { %419 = vmatpush3.bf16.msra.mxu1 %v430_v3  ;;  %379 = vmatpush3.bf16.msra.mxu0 %v430_v3  ;;  %v440_v15 = vld [vmem:[%s561_s1 + $0x30] sm:$0xff]   ;;  %v442_v17 = vld [vmem:[%s561_s1 + $0x38] sm:$0xff]   ;;  %v446_v20 = vld [vmem:[%s562_s0] ss:$8 sps:$4 sm:$0xff]   ;;  %v328_v21 = vcombine.high %v36_v18, %v36_v18  ;;  %v327_v22 = vcombine.low %v36_v18, %v36_v18 }
   0x8   :  { %412 = vmatprep.subr.bf16.mxu1 %v431_v4  ;;  %380 = vmatprep.subr.bf16.mxu0 %v431_v4  ;;  %v357_v26 = vld [vmem:[%s563_s3] sm:$0xff]   ;;  %v374_v30 = vld [vmem:[%s563_s3 + $0x8] sm:$0xff]   ;;  %v282_v60 = vld [vmem:[%s563_s3 + $0x10] sm:$0x1] }
   0x9   :  { %v345_v34 = vld [vmem:[%s564_s2] ss:$0 sm:$0xff]  ;;  %v358_v36 = vunpack.c.l.bf16 %v357_v26  ;;  %v362_v40 = vunpack.c.l.bf16 %v374_v30  ;;  %v363_v41 = vunpack.c.h.bf16 %v374_v30  ;;  %v359_v42 = vunpack.c.h.bf16 %v357_v26 }
   0xa   :  { %v31_v49 = vld [vmem:[#allocation2 + $0x20] sm:$0x3]  ;;  %v287_v61 = vunpack.c.l.bf16 %v282_v60 }
   0xb   :  { %420 = vmatpush3.bf16.msra.mxu1 %v432_v5  ;;  %381 = vmatpush3.bf16.msra.mxu0 %v432_v5 }
   0xc   :  { %413 = vmatprep.subr.bf16.mxu1 %v433_v6  ;;  %382 = vmatprep.subr.bf16.mxu0 %v433_v6 }
   0xf   :  { %421 = vmatpush3.bf16.msra.mxu1 %v434_v7  ;;  %383 = vmatpush3.bf16.msra.mxu0 %v434_v7 }
  0x10   :  { %414 = vmatprep.subr.bf16.mxu1 %v435_v8  ;;  %384 = vmatprep.subr.bf16.mxu0 %v435_v8 }
  0x13   :  { %422 = vmatpush3.bf16.msra.mxu1 %v436_v9  ;;  %385 = vmatpush3.bf16.msra.mxu0 %v436_v9 }
  0x14   :  { %415 = vmatprep.subr.bf16.mxu1 %v437_v10  ;;  %386 = vmatprep.subr.bf16.mxu0 %v437_v10 }
  0x17   :  { %423 = vmatpush3.bf16.msra.mxu1 %v438_v13  ;;  %387 = vmatpush3.bf16.msra.mxu0 %v438_v13 }
  0x18   :  { %416 = vmatprep.subr.bf16.mxu1 %v439_v14  ;;  %388 = vmatprep.subr.bf16.mxu0 %v439_v14 }
  0x1b   :  { %424 = vmatpush3.bf16.msra.mxu1 %v440_v15  ;;  %389 = vmatpush3.bf16.msra.mxu0 %v440_v15 }
  0x1c   :  { %417 = vmatprep.subr.bf16.mxu1 %v441_v16  ;;  %390 = vmatprep.subr.bf16.mxu0 %v441_v16 }
  0x1f   :  { %425 = vmatpush3.bf16.msra.mxu1 %v442_v17  ;;  %391 = vmatpush3.bf16.msra.mxu0 %v442_v17 }
  0x22   :  { %233 = vmatmul.mubr.bf16.vlgmr.msra.gmra.mrb[0].mxu1 %v443_v19  ;;  %225 = vmatmul.mubr.bf16.vlgmr.msra.gmra.mrb[0].mxu0 %v446_v20 }
  0x23   :  { %240 = vmatprep.mubr.bf16.mxu1 %v328_v21 }
  0x2a   :  { %241 = vmatmul.mubr.bf16.gmra.mrb[4].mxu1 %v327_v22 }
  0xf5   :  { %v398_v24 = vpop.f32.mrb[0].mxu1  ;;  %v392_v25 = vpop.f32.mrb[0].mxu0 }
  0xf6   :  { %v399_v27 = vpop.f32.mrb[1].mxu1  ;;  %v393_v28 = vpop.f32.mrb[1].mxu0 }
  0xf7   :  { %v400_v29 = vadd.f32 %v399_v27, %v398_v24  ;;  %v401_v31 = vpop.f32.mrb[2].mxu1  ;;  %v394_v32 = vadd.f32 %v393_v28, %v392_v25  ;;  %v395_v33 = vpop.f32.mrb[2].mxu0 }
  0xf8   :  { %v402_v35 = vpop.f32.mrb[3].mxu1  ;;  %v396_v37 = vpop.f32.mrb[3].mxu0 }
  0xf9   :  { %v403_v38 = vadd.f32 %v402_v35, %v401_v31  ;;  %v397_v39 = vadd.f32 %v396_v37, %v395_v33  ;;  %v275_v43 = vadd.f32 %v400_v29, %v345_v34  ;;  %v273_v44 = vadd.f32 %v394_v32, %v345_v34 }
  0xfb   :  { %v276_v45 = vadd.f32 %v403_v38, %v345_v34  ;;  %v288_v46 = vadd.f32 %v358_v36, %v273_v44  ;;  %v274_v47 = vadd.f32 %v397_v39, %v345_v34  ;;  %v290_v51 = vadd.f32 %v362_v40, %v275_v43 }
  0xfd   :  { %v404_v48 = vpop.f32.mrb[4].mxu1  ;;  %v291_v52 = vadd.f32 %v363_v41, %v276_v45  ;;  %v289_v53 = vadd.f32 %v359_v42, %v274_v47 }
  0xfe   :  { %v405_v50 = vpop.f32.mrb[5].mxu1 }
  0xff   :  { %v406_v54 = vadd.f32 %v405_v50, %v404_v48  ;;  %v407_v55 = vpop.f32.mrb[6].mxu1  ;;  %v372_v57 = vpack.c.bf16 %v291_v52, %v290_v51  ;;  %v367_v58 = vpack.c.bf16 %v289_v53, %v288_v46 }
 0x100   :  { %v408_v56 = vpop.f32.mrb[7].mxu1 }
 0x101   :  { %v252_v59 = vadd.f32 %v406_v54, %v31_v49  ;;  %375 = vst [vmem:[%s565_s4 + $0x8] sm:$0xff] %v372_v57   ;;  %368 = vst [vmem:[%s565_s4] sm:$0xff] %v367_v58  }
 0x103   :  { %257 = vst [vmem:[#allocation2 + $0x20] sm:$0x3] %v252_v59 }
 0x10a   :  { %v265_v62 = vld [vmem:[#allocation2 + $0x20] sm:$0x3] }
 0x10b   :  { %v277_v63 = vadd.f32 %v345_v34, %v265_v62 }
 0x10d   :  { %v292_v0 = vadd.f32 %v287_v61, %v277_v63 }
 0x10f   :  { %v355_v1 = vpack.c.bf16 %v292_v0, %v292_v0 }
 0x111   :  { %318 = vst [vmem:[%s565_s4 + $0x10] sm:$0x1] %v355_v1 }

// kernel: vit_forward.16
= control target key start
LH: loop header
LB: loop body
LE: loop exit
PB: predicated region body
PF: predicated region fallthrough
CT: control target
= control target key end

     0   :  { %vm43_vm0 = vcmask 1041408   ;;  %v560_v46 = vmov 0   ;;  %s699_s0 = inlined_call_operand.vmem [shape: bf16[34,128], index: 0, kind: input, shape index: {}]   ;;  %s700_s3 = inlined_call_operand.vmem [shape: bf16[128,256], index: 3, kind: input, shape index: {}]   ;;  %s701_s1 = inlined_call_operand.vmem [shape: f32[1,128], index: 1, kind: input, shape index: {}]   ;;  %s702_s2 = inlined_call_operand.vmem [shape: f32[1,128], index: 2, kind: input, shape index: {}]   ;;  %s703_s4 = inlined_call_operand.vmem [shape: f32[1,256], index: 4, kind: input, shape index: {}]   ;;  %s704_s5 = inlined_call_operand.vmem [shape: bf16[34,256], index: 5, kind: output, shape index: {}]  }
   0x1   :  { %v484_v0 = vld [vmem:[%s699_s0 + $0x8] sm:$0xff]   ;;  %v467_v1 = vld [vmem:[%s699_s0] sm:$0xff]   ;;  %v29_v4 = vld [vmem:[%s699_s0 + $0x10] sm:$0x1]  ;;  %315 = vmatprep.mubr.bf16.mxu1 %v560_v46  ;;  %305 = vmatprep.mubr.bf16.mxu0 %v560_v46 }
   0x2   :  { %v472_v2 = vunpack.c.l.bf16 %v484_v0  ;;  %v468_v3 = vunpack.c.l.bf16 %v467_v1  ;;  %v473_v5 = vunpack.c.h.bf16 %v484_v0  ;;  %v469_v6 = vunpack.c.h.bf16 %v467_v1  ;;  %v503_v30 = vld [vmem:[%s700_s3 + $0x4] ss:$8 sps:$4 sm:$0xff]   ;;  %v505_v31 = vld [vmem:[%s700_s3] ss:$8 sps:$4 sm:$0xff]   ;;  %v506_v32 = vld [vmem:[%s700_s3 + $0x14] ss:$8 sps:$4 sm:$0xff]  }
   0x3   :  { %v34_v7 = vunpack.c.l.bf16 %v29_v4  ;;  %486 = vmatprep.subr.bf16.mxu1 %v503_v30  ;;  %273 = vmatprep.subr.bf16.mxu0 %v503_v30  ;;  %v508_v33 = vld [vmem:[%s700_s3 + $0x10] ss:$8 sps:$4 sm:$0xff]   ;;  %v509_v34 = vld [vmem:[%s700_s3 + $0x24] ss:$8 sps:$4 sm:$0xff]   ;;  %v511_v35 = vld [vmem:[%s700_s3 + $0x20] ss:$8 sps:$4 sm:$0xff]  }
   0x4   :  { %39 = vadd.xlane.f32.xlu0 %v472_v2  ;;  %35 = vadd.xlane.f32.xlu1 %v468_v3  ;;  %v512_v36 = vld [vmem:[%s700_s3 + $0x34] ss:$8 sps:$4 sm:$0xff]   ;;  %v514_v37 = vld [vmem:[%s700_s3 + $0x30] ss:$8 sps:$4 sm:$0xff]   ;;  %v515_v38 = vld [vmem:[%s700_s3 + $0x44] ss:$8 sps:$4 sm:$0xff]  }
   0x5   :  { %v44_v8 = vsel %vm43_vm0, %v34_v7, 0.0  ;;  %494 = vmatpush1.bf16.msra.mxu1 %v505_v31  ;;  %274 = vmatpush1.bf16.msra.mxu0 %v505_v31  ;;  %v517_v39 = vld [vmem:[%s700_s3 + $0x40] ss:$8 sps:$4 sm:$0xff]   ;;  %v518_v40 = vld [vmem:[%s700_s3 + $0x54] ss:$8 sps:$4 sm:$0xff]  }
   0x6   :  { %487 = vmatprep.subr.bf16.mxu1 %v506_v32  ;;  %275 = vmatprep.subr.bf16.mxu0 %v506_v32  ;;  %v520_v41 = vld [vmem:[%s700_s3 + $0x50] ss:$8 sps:$4 sm:$0xff]   ;;  %v521_v42 = vld [vmem:[%s700_s3 + $0x64] ss:$8 sps:$4 sm:$0xff]   ;;  %v523_v43 = vld [vmem:[%s700_s3 + $0x60] ss:$8 sps:$4 sm:$0xff]  }
   0x7   :  { %v524_v44 = vld [vmem:[%s700_s3 + $0x74] ss:$8 sps:$4 sm:$0xff]   ;;  %v526_v45 = vld [vmem:[%s700_s3 + $0x70] ss:$8 sps:$4 sm:$0xff]   ;;  %v425_v0 = vld [vmem:[%s701_s1] ss:$0 sm:$0xff] }
   0x8   :  { %41 = vadd.xlane.f32.xlu0 %v473_v5  ;;  %37 = vadd.xlane.f32.xlu1 %v469_v6 }
   0x9   :  { %495 = vmatpush1.bf16.msra.mxu1 %v508_v33  ;;  %276 = vmatpush1.bf16.msra.mxu0 %v508_v33 }
   0xa   :  { %488 = vmatprep.subr.bf16.mxu1 %v509_v34  ;;  %277 = vmatprep.subr.bf16.mxu0 %v509_v34 }
   0xc   :  { %45 = vadd.xlane.f32.xlu0 %v44_v8 }
   0xd   :  { %496 = vmatpush1.bf16.msra.mxu1 %v511_v35  ;;  %278 = vmatpush1.bf16.msra.mxu0 %v511_v35 }
   0xe   :  { %489 = vmatprep.subr.bf16.mxu1 %v512_v36  ;;  %279 = vmatprep.subr.bf16.mxu0 %v512_v36 }
  0x11   :  { %497 = vmatpush1.bf16.msra.mxu1 %v514_v37  ;;  %280 = vmatpush1.bf16.msra.mxu0 %v514_v37 }
  0x12   :  { %490 = vmatprep.subr.bf16.mxu1 %v515_v38  ;;  %281 = vmatprep.subr.bf16.mxu0 %v515_v38 }
  0x15   :  { %498 = vmatpush1.bf16.msra.mxu1 %v517_v39  ;;  %282 = vmatpush1.bf16.msra.mxu0 %v517_v39 }
  0x16   :  { %491 = vmatprep.subr.bf16.mxu1 %v518_v40  ;;  %283 = vmatprep.subr.bf16.mxu0 %v518_v40 }
  0x19   :  { %499 = vmatpush1.bf16.msra.mxu1 %v520_v41  ;;  %284 = vmatpush1.bf16.msra.mxu0 %v520_v41 }
  0x1a   :  { %492 = vmatprep.subr.bf16.mxu1 %v521_v42  ;;  %285 = vmatprep.subr.bf16.mxu0 %v521_v42 }
  0x1d   :  { %500 = vmatpush1.bf16.msra.mxu1 %v523_v43  ;;  %286 = vmatpush1.bf16.msra.mxu0 %v523_v43 }
  0x1e   :  { %493 = vmatprep.subr.bf16.mxu1 %v524_v44  ;;  %287 = vmatprep.subr.bf16.mxu0 %v524_v44 }
  0x21   :  { %501 = vmatpush1.bf16.msra.mxu1 %v526_v45  ;;  %288 = vmatpush1.bf16.msra.mxu0 %v526_v45 }
  0x91   :  { %v40_v9 = vpop.xlane.xlu0 %39  ;;  %v36_v10 = vpop.xlane.xlu1 %35 }
  0x92   :  { %v50_v11 = vmul.f32 0.0078125, %v40_v9  ;;  %v48_v12 = vmul.f32 0.0078125, %v36_v10 }
  0x94   :  { %v601_v13 = vsub.f32 %v472_v2, %v50_v11  ;;  %v603_v14 = vsub.f32 %v468_v3, %v48_v12 }
  0x95   :  { %v42_v15 = vpop.xlane.xlu0 %41  ;;  %v38_v16 = vpop.xlane.xlu1 %37 }
  0x96   :  { %v51_v17 = vmul.f32 0.0078125, %v42_v15  ;;  %v60_v18 = vmul.f32 %v601_v13, %v601_v13  ;;  %v49_v19 = vmul.f32 0.0078125, %v38_v16  ;;  %v58_v22 = vmul.f32 %v603_v14, %v603_v14 }
  0x98   :  { %v607_v20 = vsub.f32 %v473_v5, %v51_v17  ;;  %67 = vadd.xlane.f32.xlu1 %v60_v18  ;;  %v609_v21 = vsub.f32 %v469_v6, %v49_v19  ;;  %v426_v5 = vld [vmem:[%s702_s2] ss:$0 sm:$0xff] }
  0x99   :  { %v46_v23 = vpop.xlane.xlu0 %45 }
  0x9a   :  { %v52_v24 = vmul.f32 0.0078125, %v46_v23  ;;  %v61_v25 = vmul.f32 %v607_v20, %v607_v20  ;;  %v59_v27 = vmul.f32 %v609_v21, %v609_v21 }
  0x9c   :  { %v615_v26 = vsub.f32 %v34_v7, %v52_v24  ;;  %69 = vadd.xlane.f32.xlu0 %v61_v25  ;;  %63 = vadd.xlane.f32.xlu1 %v58_v22 }
  0x9e   :  { %v62_v28 = vmul.f32 %v615_v26, %v615_v26 }
  0xa0   :  { %65 = vadd.xlane.f32.xlu0 %v59_v27  ;;  %v71_v29 = vsel %vm43_vm0, %v62_v28, 0.0 }
  0xa1   :  { %72 = vadd.xlane.f32.xlu1 %v71_v29  ;;  %v165_v29 = vld [vmem:[%s703_s4] sm:$0x3] }
 0x125   :  { %v68_v47 = vpop.xlane.xlu1 %67 }
 0x126   :  { %v76_v48 = vmul.f32 0.0078125, %v68_v47 }
 0x128   :  { %v81_v49 = vadd.f32 1e-05, %v76_v48 }
 0x129   :  { %v70_v50 = vpop.xlane.xlu0 %69  ;;  %v64_v51 = vpop.xlane.xlu1 %63 }
 0x12a   :  { %530 = vrsqrt.f32 %v81_v49  ;;  %v77_v52 = vmul.f32 0.0078125, %v70_v50  ;;  %v74_v53 = vmul.f32 0.0078125, %v64_v51 }
 0x12c   :  { %v82_v54 = vadd.f32 1e-05, %v77_v52  ;;  %v79_v55 = vadd.f32 1e-05, %v74_v53 }
 0x12d   :  { %v66_v56 = vpop.xlane.xlu0 %65 }
 0x12e   :  { %532 = vrsqrt.f32 %v82_v54  ;;  %v75_v57 = vmul.f32 0.0078125, %v66_v56  ;;  %v73_v58 = vpop.xlane.xlu1 %72 }
 0x12f   :  { %534 = vrsqrt.f32 %v79_v55  ;;  %v78_v59 = vmul.f32 0.0078125, %v73_v58 }
 0x130   :  { %v80_v60 = vadd.f32 1e-05, %v75_v57 }
 0x131   :  { %v83_v61 = vadd.f32 1e-05, %v78_v59 }
 0x132   :  { %536 = vrsqrt.f32 %v80_v60 }
 0x133   :  { %538 = vrsqrt.f32 %v83_v61 }
 0x134   :  { %v531_v62 = vpop.eup %530 }
 0x135   :  { %v91_v63 = vmul.f32 %v531_v62, %v601_v13 }
 0x137   :  { %v103_v3 = vmul.f32 %v425_v0, %v91_v63 }
 0x138   :  { %v533_v1 = vpop.eup %532 }
 0x139   :  { %v535_v2 = vpop.eup %534  ;;  %v92_v4 = vmul.f32 %v533_v1, %v607_v20  ;;  %v115_v10 = vadd.f32 %v426_v5, %v103_v3 }
 0x13a   :  { %v89_v6 = vmul.f32 %v535_v2, %v603_v14 }
 0x13b   :  { %v104_v7 = vmul.f32 %v425_v0, %v92_v4 }
 0x13c   :  { %v537_v8 = vpop.eup %536  ;;  %v101_v12 = vmul.f32 %v425_v0, %v89_v6 }
 0x13d   :  { %v539_v9 = vpop.eup %538  ;;  %v116_v11 = vadd.f32 %v426_v5, %v104_v7  ;;  %v90_v13 = vmul.f32 %v537_v8, %v609_v21  ;;  %v167_v21 = vlaneseq }
 0x13e   :  { %v93_v15 = vmul.f32 %v539_v9, %v615_v26  ;;  %v113_v19 = vadd.f32 %v426_v5, %v101_v12 }
 0x13f   :  { %v482_v16 = vpack.c.bf16 %v116_v11, %v115_v10  ;;  %v102_v17 = vmul.f32 %v425_v0, %v90_v13  ;;  %v168_v26 = vshrl.u32 %v167_v21, 7 }
 0x140   :  { %v105_v18 = vmul.f32 %v425_v0, %v93_v15 }
 0x141   :  { %485 = vst [vmem:[#allocation2 + $0x8] sm:$0xff] %v482_v16   ;;  %v114_v20 = vadd.f32 %v426_v5, %v102_v17  ;;  %v169_v28 = vsub.s32 0, %v168_v26  ;;  %v173_v30 = vsub.s32 1, %v168_v26 }
 0x142   :  { %v117_v22 = vadd.f32 %v426_v5, %v105_v18 }
 0x143   :  { %v477_v23 = vpack.c.bf16 %v114_v20, %v113_v19  ;;  %v170_v31 = vrot.slane %v165_v29, %v169_v28  ;;  %v174_v32 = vrot.slane %v165_v29, %v173_v30 }
 0x144   :  { %v460_v24 = vpack.c.bf16 %v117_v22, %v117_v22 }
 0x145   :  { %478 = vst [vmem:[#allocation2] sm:$0xff] %v477_v23  }
 0x146   :  { %143 = vst [vmem:[#allocation2 + $0x10] sm:$0x1] %v460_v24 }
 0x148   :  { %v527_v14 = vld [vmem:[#allocation2 + $0x8] sm:$0xff]  }
 0x149   :  { %316 = vmatmul.mubr.bf16.vlgmr.msra.gmra.mrb[0].mxu1 %v527_v14 }
 0x14a   :  { %325 = vmatprep.mubr.bf16.mxu1 %v560_v46 }
 0x14c   :  { %v528_v25 = vld [vmem:[#allocation2] sm:$0xff]  }
 0x14d   :  { %306 = vmatmul.mubr.bf16.vlgmr.msra.gmra.mrb[0].mxu0 %v528_v25  ;;  %v529_v27 = vld [vmem:[#allocation2 + $0x10] ss:$0 sps:$4 sm:$0x11]  }
 0x151   :  { %326 = vmatmul.mubr.bf16.gmra.mrb[4].mxu1 %v529_v27 }
 0x21c   :  { %v317_v33 = vpop.f32.mrb[0].mxu1 }
 0x21d   :  { %v318_v34 = vadd.f32 %v317_v33, %v170_v31  ;;  %v319_v35 = vpop.f32.mrb[1].mxu1 }
 0x21e   :  { %v320_v36 = vadd.f32 %v319_v35, %v174_v32  ;;  %v321_v37 = vpop.f32.mrb[2].mxu1 }
 0x21f   :  { %v348_v38 = vmul.f32 0.70710677, %v318_v34  ;;  %v322_v39 = vadd.f32 %v321_v37, %v170_v31  ;;  %v323_v40 = vpop.f32.mrb[3].mxu1  ;;  %v338_v3 = vmul.f32 0.5, %v318_v34 }
 0x220   :  { %v349_v41 = vmul.f32 0.70710677, %v320_v36  ;;  %v324_v42 = vadd.f32 %v323_v40, %v174_v32  ;;  %v307_v43 = vpop.f32.mrb[0].mxu0  ;;  %v339_v6 = vmul.f32 0.5, %v320_v36 }
 0x221   :  { %540 = verf.f32 %v348_v38  ;;  %v350_v44 = vmul.f32 0.70710677, %v322_v39  ;;  %v308_v45 = vadd.f32 %v307_v43, %v170_v31  ;;  %v309_v46 = vpop.f32.mrb[1].mxu0  ;;  %v340_v10 = vmul.f32 0.5, %v322_v39 }
 0x222   :  { %542 = verf.f32 %v349_v41  ;;  %v351_v47 = vmul.f32 0.70710677, %v324_v42  ;;  %v310_v48 = vadd.f32 %v309_v46, %v174_v32  ;;  %v311_v49 = vpop.f32.mrb[2].mxu0  ;;  %v341_v15 = vmul.f32 0.5, %v324_v42 }
 0x223   :  { %544 = verf.f32 %v350_v44  ;;  %v344_v50 = vmul.f32 0.70710677, %v308_v45  ;;  %v312_v51 = vadd.f32 %v311_v49, %v170_v31  ;;  %v313_v52 = vpop.f32.mrb[3].mxu0  ;;  %v334_v19 = vmul.f32 0.5, %v308_v45 }
 0x224   :  { %546 = verf.f32 %v351_v47  ;;  %v345_v53 = vmul.f32 0.70710677, %v310_v48  ;;  %v314_v54 = vadd.f32 %v313_v52, %v174_v32  ;;  %v327_v55 = vpop.f32.mrb[4].mxu1  ;;  %v335_v14 = vmul.f32 0.5, %v310_v48 }
 0x225   :  { %548 = verf.f32 %v344_v50  ;;  %v346_v56 = vmul.f32 0.70710677, %v312_v51  ;;  %v328_v57 = vadd.f32 %v327_v55, %v170_v31  ;;  %v329_v58 = vpop.f32.mrb[5].mxu1  ;;  %v336_v26 = vmul.f32 0.5, %v312_v51 }
 0x226   :  { %550 = verf.f32 %v345_v53  ;;  %v347_v59 = vmul.f32 0.70710677, %v314_v54  ;;  %v330_v60 = vadd.f32 %v329_v58, %v174_v32  ;;  %v331_v61 = vpop.f32.mrb[6].mxu1  ;;  %v337_v32 = vmul.f32 0.5, %v314_v54 }
 0x227   :  { %552 = verf.f32 %v346_v56  ;;  %v352_v62 = vmul.f32 0.70710677, %v328_v57  ;;  %v332_v63 = vpop.f32.mrb[7].mxu1  ;;  %v342_v36 = vmul.f32 0.5, %v328_v57 }
 0x228   :  { %554 = verf.f32 %v347_v59  ;;  %v353_v0 = vmul.f32 0.70710677, %v330_v60  ;;  %v343_v40 = vmul.f32 0.5, %v330_v60 }
 0x229   :  { %556 = verf.f32 %v352_v62 }
 0x22a   :  { %558 = verf.f32 %v353_v0 }
 0x22b   :  { %v541_v1 = vpop.eup %540 }
 0x22c   :  { %v543_v2 = vpop.eup %542  ;;  %v368_v4 = vadd.f32 1.0, %v541_v1 }
 0x22d   :  { %v545_v5 = vpop.eup %544  ;;  %v369_v7 = vadd.f32 1.0, %v543_v2 }
 0x22e   :  { %v547_v8 = vpop.eup %546  ;;  %v378_v9 = vmul.f32 %v368_v4, %v338_v3  ;;  %v370_v11 = vadd.f32 1.0, %v545_v5 }
 0x22f   :  { %v549_v12 = vpop.eup %548  ;;  %v379_v13 = vmul.f32 %v369_v7, %v339_v6  ;;  %v371_v16 = vadd.f32 1.0, %v547_v8 }
 0x230   :  { %v551_v17 = vpop.eup %550  ;;  %v380_v18 = vmul.f32 %v370_v11, %v340_v10  ;;  %v364_v20 = vadd.f32 1.0, %v549_v12 }
 0x231   :  { %v553_v22 = vpop.eup %552  ;;  %v463_v23 = vpack.c.bf16 %v379_v13, %v378_v9  ;;  %v381_v24 = vmul.f32 %v371_v16, %v341_v15  ;;  %v365_v25 = vadd.f32 1.0, %v551_v17 }
 0x232   :  { %v555_v27 = vpop.eup %554  ;;  %v374_v21 = vmul.f32 %v364_v20, %v334_v19  ;;  %v366_v28 = vadd.f32 1.0, %v553_v22 }
 0x233   :  { %v557_v29 = vpop.eup %556  ;;  %418 = vst [vmem:[%s704_s5 + $0x10] sm:$0xff] %v463_v23  ;;  %v464_v30 = vpack.c.bf16 %v381_v24, %v380_v18  ;;  %v375_v31 = vmul.f32 %v365_v25, %v335_v14  ;;  %v367_v33 = vadd.f32 1.0, %v555_v27 }
 0x234   :  { %v559_v34 = vpop.eup %558  ;;  %v376_v35 = vmul.f32 %v366_v28, %v336_v26  ;;  %v372_v37 = vadd.f32 1.0, %v557_v29 }
 0x235   :  { %419 = vst [vmem:[%s704_s5 + $0x18] sm:$0xff] %v464_v30  ;;  %v461_v38 = vpack.c.bf16 %v375_v31, %v374_v21  ;;  %v377_v39 = vmul.f32 %v367_v33, %v337_v32  ;;  %v373_v41 = vadd.f32 1.0, %v559_v34 }
 0x236   :  { %v382_v42 = vmul.f32 %v372_v37, %v342_v36 }
 0x237   :  { %416 = vst [vmem:[%s704_s5] sm:$0xff] %v461_v38  ;;  %v462_v43 = vpack.c.bf16 %v377_v39, %v376_v35  ;;  %v383_v44 = vmul.f32 %v373_v41, %v343_v40 }
 0x239   :  { %417 = vst [vmem:[%s704_s5 + $0x8] sm:$0xff] %v462_v43  ;;  %v465_v45 = vpack.c.bf16 %v383_v44, %v382_v42 }
 0x23b   :  { %420 = vst [vmem:[%s704_s5 + $0x20] sm:$0x11] %v465_v45 }

// kernel: vit_forward.23
= control target key start
LH: loop header
LB: loop body
LE: loop exit
PB: predicated region body
PF: predicated region fallthrough
CT: control target
= control target key end

     0   :  { %vm28_vm0 = vcmask 1041408   ;;  %s346_s0 = inlined_call_operand.vmem [shape: bf16[2,128], index: 0, kind: input, shape index: {}]   ;;  %s347_s1 = inlined_call_operand.vmem [shape: f32[1,128], index: 1, kind: input, shape index: {}]   ;;  %s348_s2 = inlined_call_operand.vmem [shape: f32[1,128], index: 2, kind: input, shape index: {}]   ;;  %s349_s3 = inlined_call_operand.vmem [shape: bf16[128,128], index: 3, kind: input, shape index: {}]   ;;  %s350_s4 = inlined_call_operand.vmem [shape: f32[1,128], index: 4, kind: input, shape index: {}]   ;;  %s351_s5 = inlined_call_operand.hbm [shape: f32[2,128], index: 5, kind: output, shape index: {}]  }
   0x1   :  { %v26_v0 = vld [vmem:[%s346_s0] sm:$0x1] }
   0x2   :  { %v27_v1 = vunpack.c.l.bf16 %v26_v0 }
   0x4   :  { %v29_v2 = vsel %vm28_vm0, %v27_v1, 0.0 }
   0x5   :  { %30 = vadd.xlane.f32.xlu0 %v29_v2 }
   0x6   :  { %10 = vsyncpa [#allocation4], 0  ;;  %v265_v3 = vmov 0.0   ;;  %v231_v9 = vld [vmem:[%s349_s3] sm:$0xff]   ;;  %v232_v10 = vld [vmem:[%s349_s3 + $0x8] sm:$0xff]   ;;  %vm266_vm1 = vmmov 0  }
   0x7   :  { %208 = vmatprep.subr.bf16.mxu0 %v265_v3  ;;  %v233_v11 = vld [vmem:[%s349_s3 + $0x10] sm:$0xff]   ;;  %v234_v12 = vld [vmem:[%s349_s3 + $0x18] sm:$0xff]   ;;  %v235_v13 = vld [vmem:[%s349_s3 + $0x20] sm:$0xff]   ;;  %224 = vmatprep.mubr.msk.bf16.mxu0 %vm266_vm1, %v265_v3  ;;  %s267_s15 = smov [#allocation3]  }
   0x8   :  { %209 = vmatpush3.bf16.msra.mxu0 %v231_v9  ;;  %v236_v14 = vld [vmem:[%s349_s3 + $0x28] sm:$0xff]   ;;  %v237_v15 = vld [vmem:[%s349_s3 + $0x30] sm:$0xff]   ;;  %v238_v16 = vld [vmem:[%s349_s3 + $0x38] sm:$0xff]   ;;  %s180_s16 = sshll.u32 %s267_s15, 4  ;;  %s181_s16 = int_to_ptr.vmem [resolvable:$true] %s180_s16 }
   0x9   :  { %210 = vmatprep.subr.bf16.mxu0 %v265_v3  ;;  %v188_v21 = vld [vmem:[%s347_s1] ss:$0 sm:$0xff]  ;;  %s241_s1 = scalar_lea.vmem %s181_s16, 32  ;;  %p246_p1 = scmp.lt.s32.totalorder %s181_s16, %s181_s16 }
   0xa   :  { %v189_v23 = vld [vmem:[%s348_s2] ss:$0 sm:$0xff]  ;;  %p242_p0 = scmp.ne.s32.totalorder %s181_s16, %s241_s1  ;;  %p247_p2 = scmp.lt.s32.totalorder %s241_s1, %s241_s1 }
   0xb   :  { %v190_v28 = vld [vmem:[%s350_s4] ss:$0 sm:$0xff] }
   0xc   :  { %211 = vmatpush3.bf16.msra.mxu0 %v232_v10  ;;  %p248_p3 = por %p247_p2, %p246_p1 }
   0xd   :  { %212 = vmatprep.subr.bf16.mxu0 %v265_v3 }
   0xe   :  { %p249_p4 = pnand %p248_p3, %p242_p0 }
  0x10   :  { %213 = vmatpush3.bf16.msra.mxu0 %v233_v11 }
  0x11   :  { %214 = vmatprep.subr.bf16.mxu0 %v265_v3 }
  0x14   :  { %215 = vmatpush3.bf16.msra.mxu0 %v234_v12 }
  0x15   :  { %216 = vmatprep.subr.bf16.mxu0 %v265_v3 }
  0x18   :  { %217 = vmatpush3.bf16.msra.mxu0 %v235_v13 }
  0x19   :  { %218 = vmatprep.subr.bf16.mxu0 %v265_v3 }
  0x1c   :  { %219 = vmatpush3.bf16.msra.mxu0 %v236_v14 }
  0x1d   :  { %220 = vmatprep.subr.bf16.mxu0 %v265_v3 }
  0x20   :  { %221 = vmatpush3.bf16.msra.mxu0 %v237_v15 }
  0x21   :  { %222 = vmatprep.subr.bf16.mxu0 %v265_v3 }
  0x24   :  { %223 = vmatpush3.bf16.msra.mxu0 %v238_v16 }
  0x92   :  { %v31_v4 = vpop.xlane.xlu0 %30 }
  0x93   :  { %v33_v5 = vmul.f32 0.0078125, %v31_v4 }
  0x95   :  { %v34_v6 = vsub.f32 %v27_v1, %v33_v5 }
  0x97   :  { %v35_v7 = vmul.f32 %v34_v6, %v34_v6 }
  0x99   :  { %v36_v8 = vsel %vm28_vm0, %v35_v7, 0.0 }
  0x9a   :  { %37 = vadd.xlane.f32.xlu0 %v36_v8 }
 0x127   :  { %v38_v17 = vpop.xlane.xlu0 %37 }
 0x128   :  { %v39_v18 = vmul.f32 0.0078125, %v38_v17 }
 0x12a   :  { %v40_v19 = vadd.f32 1e-05, %v39_v18 }
 0x12c   :  { %239 = vrsqrt.f32 %v40_v19 }
 0x136   :  { %v240_v20 = vpop.eup %239 }
 0x137   :  { %v42_v22 = vmul.f32 %v240_v20, %v34_v6 }
 0x139   :  { %v50_v24 = vmul.f32 %v188_v21, %v42_v22 }
 0x13b   :  { %v58_v25 = vadd.f32 %v189_v23, %v50_v24 }
 0x13d   :  { %v59_v26 = vpack.c.bf16 %v58_v25, %v58_v25 }
 0x13f   :  { %60 = vst [vmem:[#allocation2] sm:$0x1] %v59_v26 }
 0x146   :  { %v61_v27 = vld [vmem:[#allocation2] sm:$0x1] }
 0x147   :  { %225 = vmatmul.mubr.bf16.vlgmr.msra.gmra.mrb[0].mxu0 %v61_v27 }
 0x21a   :  { %v167_v29 = vpop.f32.mrb[0].mxu0 }
 0x21b   :  { %v168_v30 = vadd.f32 %v190_v28, %v167_v29  ;;  %v226_v31 = vpop.f32.mrb[1].mxu0 }
 0x21c   :  { %v170_v32 = vpop.f32.mrb[2].mxu0 }
 0x21d   :  { %173 = vst [vmem:[#allocation3] sm:$0x3] %v168_v30  ;;  %v227_v33 = vpop.f32.mrb[3].mxu0 }
 0x21e   :  { %252 = shalt.err (!%p249_p4)
}
 0x21f   :  { %s253_s4 = scalar_lea.hbm %s351_s5, 32 }
 0x220   :  { %p254_p5 = scmp.ne.s32.totalorder %s351_s5, %s253_s4  ;;  %p257_p6 = scmp.lt.u32.totalorder %s253_s4, %s351_s5 }
 0x222   :  { %p259_p7 = pnand %p257_p6, %p254_p5 }
 0x224   :  { %262 = shalt.err (!%p259_p7)
}
 0x225   :  { %183 = dma.vmem_to_hbm [thread:$0]  %s181_s16, 32, %s351_s5, [#allocation4]  }
 0x226   :  { %263 = dma.done.wait [#allocation4], 32  }
 0x227   :  { %264 = vsyncadd [#allocation4], 4294967264 }
 0x228   :  { %187 = vsyncpa [#allocation4], 1 }

</bundles_post_ra>
